<compile_context>
chip_gen: v5e
topology: v5e:2x2
jax: 0.10.0
libtpu: 0.0.40
codegen_flags: <defaults>
</compile_context>

<pallas_src>
import jax
import jax.numpy as jnp
from jax import lax
from jax.experimental import pallas as pl
from jax.experimental.pallas import tpu as pltpu

_LANE = 128      # TPU lane width (last vreg dim)
_SUBLANE = 8     # f32 sublane count


def _ceil_to(x, m):
    return -(-x // m) * m


def _col_to_row(v_col):
    """(K, 1) -> (1, K) via iota-compare + sublane reduce.

    Avoids a skinny (K,1)->(1,K) transpose relayout; pure VPU/XLU work on a
    (K, K) slab (trivial for K up to a few hundred) and guaranteed to lower.
    """
    k = v_col.shape[0]
    ii = lax.broadcasted_iota(jnp.int32, (k, k), 0)
    jj = lax.broadcasted_iota(jnp.int32, (k, k), 1)
    return jnp.sum(jnp.where(ii == jj, v_col, 0.0), axis=0, keepdims=True)


def _tag_loss_kernel(ind0_ref, ind1_ref, mask_ref, t0_ref, t1_ref,
                     pull_ref, push_ref, acc0_ref, acc1_ref):
    """Grid = (B, num_hw_tiles).

    Per step: one-hot row-select the current HW tile of both tag maps on the
    MXU and accumulate the selected (Kp, 128) rows.  On the last tile of each
    batch element: lane-extract the gathered tags and compute pull / push.
    """
    ti = pl.program_id(1)
    n_tiles = pl.num_programs(1)
    tile_rows = t0_ref.shape[1]
    kp = acc0_ref.shape[0]

    @pl.when(ti == 0)
    def _init():
        acc0_ref[...] = jnp.zeros_like(acc0_ref)
        acc1_ref[...] = jnp.zeros_like(acc1_ref)

    # ---- stage 1: row select on the MXU (one-hot x f32, exact) -------------
    row_base = ti * tile_rows
    row_iota = lax.broadcasted_iota(jnp.int32, (kp, tile_rows), 1)

    i0 = ind0_ref[0]                                     # (Kp, 1) int32
    r0 = jnp.right_shift(i0, 7) - row_base               # flat // 128 - base
    oh0 = (row_iota == r0).astype(jnp.float32)           # (Kp, tile_rows) 0/1
    acc0_ref[...] += jnp.dot(oh0, t0_ref[0],
                             preferred_element_type=jnp.float32,
                             precision=lax.Precision.HIGHEST)

    i1 = ind1_ref[0]
    r1 = jnp.right_shift(i1, 7) - row_base
    oh1 = (row_iota == r1).astype(jnp.float32)
    acc1_ref[...] += jnp.dot(oh1, t1_ref[0],
                             preferred_element_type=jnp.float32,
                             precision=lax.Precision.HIGHEST)

    # ---- stage 2 + loss terms: once per batch element, on its last tile ----
    @pl.when(ti == n_tiles - 1)
    def _finalize():
        eps = jnp.float32(1e-4)
        lane_iota = lax.broadcasted_iota(jnp.int32, (kp, _LANE), 1)

        l0 = jnp.bitwise_and(ind0_ref[0], _LANE - 1)     # (Kp, 1)
        l1 = jnp.bitwise_and(ind1_ref[0], _LANE - 1)
        t0 = jnp.sum(jnp.where(lane_iota == l0, acc0_ref[...], 0.0),
                     axis=1, keepdims=True)              # (Kp, 1)
        t1 = jnp.sum(jnp.where(lane_iota == l1, acc1_ref[...], 0.0),
                     axis=1, keepdims=True)

        m = mask_ref[0].astype(jnp.float32)              # (Kp, 1); pads are 0
        sel = (m != 0.0).astype(jnp.float32)             # boolean-index equiv.
        num = jnp.sum(m, axis=0, keepdims=True)          # (1, 1)

        # pull: (t0-mean)^2 + (t1-mean)^2 == 0.5 * (t0 - t1)^2
        diff = t0 - t1
        pull = jnp.sum(diff * diff * sel, axis=0, keepdims=True) * 0.5 / (num + eps)
        pull_ref[0] = pull

        # push: pairwise margin term over valid pairs (matches (m_i+m_j)==2)
        tag_mean = (t0 + t1) * 0.5                       # (Kp, 1)
        mean_j = _col_to_row(tag_mean)                   # (1, Kp)
        m_j = _col_to_row(m)                             # (1, Kp)
        pair = ((m + m_j) == 2.0).astype(jnp.float32)    # (Kp, Kp)
        num2 = (num - 1.0) * num
        a = 1.0 / (num2 + eps)
        bconst = -(1.0 / (num + eps)) * a                # folds "- 1/(num+eps)"
        d = jnp.maximum(1.0 - jnp.abs(mean_j - tag_mean), 0.0)
        d = (d * a + bconst) * pair
        push = jnp.sum(jnp.sum(d, axis=1, keepdims=True), axis=0, keepdims=True)
        push_ref[0] = push


def tag_loss_2(tag1, tag2, ind1, ind2, mask, *, max_tile_rows=64):
    """Forward pass of TagLoss_2.  Returns (pull, push) scalars."""
    b, c, h, w = tag1.shape
    assert c == 1, "TagLoss_2 assumes a single-channel tag map"
    hw = h * w

    # --- HW tiling: (B, HW) -> (B, rows, 128); rows split into tile_rows ----
    rows = _ceil_to(hw, _LANE) // _LANE
    if rows <= max_tile_rows:
        tile_rows = _ceil_to(rows, _SUBLANE)             # single tile
        rows_pad = tile_rows
    else:
        tile_rows = max_tile_rows                        # 64 rows = 32 KiB/map
        rows_pad = _ceil_to(rows, tile_rows)
    hw_pad = rows_pad * _LANE
    num_tiles = rows_pad // tile_rows

    # C == 1: NCHW -> (B, HW) is a pure reshape; gather runs in-kernel.
    t0f = tag1.reshape(b, hw).astype(jnp.float32)
    t1f = tag2.reshape(b, hw).astype(jnp.float32)
    if hw_pad != hw:
        t0f = jnp.pad(t0f, ((0, 0), (0, hw_pad - hw)))
        t1f = jnp.pad(t1f, ((0, 0), (0, hw_pad - hw)))
    t0m = t0f.reshape(b, rows_pad, _LANE)
    t1m = t1f.reshape(b, rows_pad, _LANE)

    # --- K padded to the lane width; padded slots carry mask == 0 -----------
    k = ind1.shape[1]
    kp = _ceil_to(max(k, _LANE), _LANE)
    ind1 = jnp.clip(ind1.astype(jnp.int32), 0, hw - 1)   # guard stray indices
    ind2 = jnp.clip(ind2.astype(jnp.int32), 0, hw - 1)
    mask = mask.astype(jnp.float32)
    if kp != k:
        pad = ((0, 0), (0, kp - k))
        ind1 = jnp.pad(ind1, pad)
        ind2 = jnp.pad(ind2, pad)
        mask = jnp.pad(mask, pad)
    ind1 = ind1.reshape(b, kp, 1)    # K lives on sublanes inside the kernel
    ind2 = ind2.reshape(b, kp, 1)
    mask = mask.reshape(b, kp, 1)

    flops = 4 * b * kp * hw_pad + 8 * b * kp * kp
    bytes_accessed = 8 * b * hw_pad + 12 * b * kp + 8 * b

    grid_spec = pltpu.PrefetchScalarGridSpec(
        num_scalar_prefetch=0,
        grid=(b, num_tiles),
        in_specs=[
            pl.BlockSpec((1, kp, 1), lambda bi, ti: (bi, 0, 0)),          # ind1
            pl.BlockSpec((1, kp, 1), lambda bi, ti: (bi, 0, 0)),          # ind2
            pl.BlockSpec((1, kp, 1), lambda bi, ti: (bi, 0, 0)),          # mask
            pl.BlockSpec((1, tile_rows, _LANE), lambda bi, ti: (bi, ti, 0)),  # tag1
            pl.BlockSpec((1, tile_rows, _LANE), lambda bi, ti: (bi, ti, 0)),  # tag2
        ],
        out_specs=(
            pl.BlockSpec((1, 1, 1), lambda bi, ti: (bi, 0, 0)),
            pl.BlockSpec((1, 1, 1), lambda bi, ti: (bi, 0, 0)),
        ),
        scratch_shapes=[
            pltpu.VMEM((kp, _LANE), jnp.float32),   # accumulated row-select, tag1
            pltpu.VMEM((kp, _LANE), jnp.float32),   # accumulated row-select, tag2
        ],
    )

    pull_b, push_b = pl.pallas_call(
        _tag_loss_kernel,
        out_shape=(
            jax.ShapeDtypeStruct((b, 1, 1), jnp.float32),
            jax.ShapeDtypeStruct((b, 1, 1), jnp.float32),
        ),
        grid_spec=grid_spec,
        compiler_params=pltpu.CompilerParams(
            dimension_semantics=("parallel", "arbitrary"),
            vmem_limit_bytes=32 * 1024 * 1024,
        ),
        cost_estimate=pl.CostEstimate(
            flops=int(flops), transcendentals=0,
            bytes_accessed=int(bytes_accessed)),
    )(ind1, ind2, mask, t0m, t1m)

    return jnp.sum(pull_b), jnp.sum(push_b)


# ---------------------------------------------------------------------------
# Pure-JAX reference mirroring the PyTorch module (for verification only).
# ---------------------------------------------------------------------------
def _transpose_and_gather_feat(feat, ind):
    b, c, h, w = feat.shape
    feat = jnp.transpose(feat, (0, 2, 3, 1)).reshape(b, h * w, c)
    return jnp.take_along_axis(feat, ind[:, :, None], axis=1)


def _reference(tag1, tag2, ind1, ind2, mask):
    t0 = _transpose_and_gather_feat(tag1, ind1)[..., 0].astype(jnp.float32)
    t1 = _transpose_and_gather_feat(tag2, ind2)[..., 0].astype(jnp.float32)
    m = mask.astype(jnp.float32)
    num = jnp.sum(m, axis=1, keepdims=True)
    tag_mean = (t0 + t1) / 2.0
    sel = m != 0.0
    d0 = jnp.where(sel, (t0 - tag_mean) ** 2 / (num + 1e-4), 0.0)
    d1 = jnp.where(sel, (t1 - tag_mean) ** 2 / (num + 1e-4), 0.0)
    pull = jnp.sum(d0) + jnp.sum(d1)
    pm = (m[:, None, :] + m[:, :, None]) == 2.0
    num3 = num[:, :, None]
    num2 = (num3 - 1.0) * num3
    dist = tag_mean[:, None, :] - tag_mean[:, :, None]
    dist = jnp.maximum(1.0 - jnp.abs(dist), 0.0)
    dist = (dist - 1.0 / (num3 + 1e-4)) / (num2 + 1e-4)
    push = jnp.sum(jnp.where(pm, dist, 0.0))
    return pull, push


if __name__ == "__main__":
    # TagLoss_2 has no learnable parameters; only inputs need to be built.
    B, C, H, W, K = 2, 1, 16, 16, 8
    key = jax.random.PRNGKey(0)
    k1, k2, k3, k4 = jax.random.split(key, 4)

    tag1 = jax.random.normal(k1, (B, C, H, W), dtype=jnp.float32)
    tag2 = jax.random.normal(k2, (B, C, H, W), dtype=jnp.float32)
    ind1 = jax.random.randint(k3, (B, K), 0, H * W, dtype=jnp.int32)
    ind2 = jax.random.randint(k4, (B, K), 0, H * W, dtype=jnp.int32)
    # mask: first few detections valid per batch element (0/1 float mask)
    mask = (jnp.arange(K)[None, :] < jnp.array([[5], [3]])).astype(jnp.float32)

    pull, push = jax.jit(tag_loss_2)(tag1, tag2, ind1, ind2, mask)
    pull = jax.block_until_ready(pull)
    push = jax.block_until_ready(push)

    ref_pull, ref_push = _reference(tag1, tag2, ind1, ind2, mask)
    assert jnp.allclose(pull, ref_pull, atol=1e-4, rtol=1e-4), (pull, ref_pull)
    assert jnp.allclose(push, ref_push, atol=1e-4, rtol=1e-4), (push, ref_push)

    print("KERNEL_OK")
</pallas_src>

<mosaic_0001>
module attributes {stable_mosaic.version = 11 : i64} {
  func.func @_tag_loss_kernel(%arg0: i32, %arg1: i32, %arg2: memref<1x128x1xi32, #tpu.memory_space<vmem>>, %arg3: memref<1x128x1xi32, #tpu.memory_space<vmem>>, %arg4: memref<1x128x1xf32, #tpu.memory_space<vmem>>, %arg5: memref<1x8x128xf32, #tpu.memory_space<vmem>>, %arg6: memref<1x8x128xf32, #tpu.memory_space<vmem>>, %arg7: memref<1x1x1xf32, #tpu.memory_space<vmem>>, %arg8: memref<1x1x1xf32, #tpu.memory_space<vmem>>, %arg9: memref<128x128xf32, #tpu.memory_space<vmem>>, %arg10: memref<128x128xf32, #tpu.memory_space<vmem>>) attributes {dimension_semantics = [#tpu.dimension_semantics<parallel>, #tpu.dimension_semantics<arbitrary>], iteration_bounds = array<i64: 2, 1>, scalar_prefetch = 0 : i64, scratch_operands = 2 : i64, tpu.core_type = #tpu.core_type<tc>, window_params = [{transform_indices = @transform_0, window_bounds = array<i64: 1, 128, 1>}, {transform_indices = @transform_1, window_bounds = array<i64: 1, 128, 1>}, {transform_indices = @transform_2, window_bounds = array<i64: 1, 128, 1>}, {transform_indices = @transform_3, window_bounds = array<i64: 1, 8, 128>}, {transform_indices = @transform_4, window_bounds = array<i64: 1, 8, 128>}, {transform_indices = @transform_5, window_bounds = array<i64: 1, 1, 1>}, {transform_indices = @transform_6, window_bounds = array<i64: 1, 1, 1>}]} {
    %c0_i32 = arith.constant 0 : i32
    %0 = arith.cmpi eq, %arg1, %c0_i32 : i32
    %1 = arith.extui %0 : i1 to i32
    %c0_i32_0 = arith.constant 0 : i32
    %2 = arith.cmpi ne, %1, %c0_i32_0 : i32
    scf.if %2 {
      %cst_24 = arith.constant 0.000000e+00 : f32
      %40 = vector.broadcast %cst_24 : f32 to vector<128x128xf32>
      %c0_25 = arith.constant 0 : index
      %c0_26 = arith.constant 0 : index
      %41 = vector.load %arg9[%c0_25, %c0_26] : memref<128x128xf32, #tpu.memory_space<vmem>>, vector<128x128xf32>
      tpu.vector_store %arg9[%c0_25, %c0_26], %40 {strides = array<i32>} : memref<128x128xf32, #tpu.memory_space<vmem>>, vector<128x128xf32>,
      %cst_27 = arith.constant 0.000000e+00 : f32
      %42 = vector.broadcast %cst_27 : f32 to vector<128x128xf32>
      %c0_28 = arith.constant 0 : index
      %c0_29 = arith.constant 0 : index
      %43 = vector.load %arg10[%c0_28, %c0_29] : memref<128x128xf32, #tpu.memory_space<vmem>>, vector<128x128xf32>
      tpu.vector_store %arg10[%c0_28, %c0_29], %42 {strides = array<i32>} : memref<128x128xf32, #tpu.memory_space<vmem>>, vector<128x128xf32>,
    } else {
    }
    %c8_i32 = arith.constant 8 : i32
    %3 = arith.muli %arg1, %c8_i32 : i32
    %4 = tpu.iota {dimensions = array<i32: 1>} : vector<128x8xi32>
    %c0 = arith.constant 0 : index
    %c0_1 = arith.constant 0 : index
    %c0_2 = arith.constant 0 : index
    %5 = vector.load %arg2[%c0, %c0_1, %c0_2] : memref<1x128x1xi32, #tpu.memory_space<vmem>>, vector<1x128x1xi32>
    %6 = vector.shape_cast %5 : vector<1x128x1xi32> to vector<128x1xi32>
    %c7_i32 = arith.constant 7 : i32
    %7 = vector.broadcast %c7_i32 : i32 to vector<128x1xi32>
    %8 = arith.shrsi %6, %7 : vector<128x1xi32>
    %9 = vector.broadcast %3 : i32 to vector<128x1xi32>
    %10 = arith.subi %8, %9 : vector<128x1xi32>
    %11 = vector.broadcast %10 : vector<128x1xi32> to vector<128x8xi32>
    %12 = arith.cmpi eq, %4, %11 : vector<128x8xi32>
    %13 = arith.extui %12 : vector<128x8xi1> to vector<128x8xi32>
    %14 = arith.sitofp %13 : vector<128x8xi32> to vector<128x8xf32>
    %c0_3 = arith.constant 0 : index
    %c0_4 = arith.constant 0 : index
    %15 = vector.load %arg9[%c0_3, %c0_4] : memref<128x128xf32, #tpu.memory_space<vmem>>, vector<128x128xf32>
    %c0_5 = arith.constant 0 : index
    %c0_6 = arith.constant 0 : index
    %c0_7 = arith.constant 0 : index
    %16 = vector.load %arg5[%c0_5, %c0_6, %c0_7] : memref<1x8x128xf32, #tpu.memory_space<vmem>>, vector<1x8x128xf32>
    %17 = vector.shape_cast %16 : vector<1x8x128xf32> to vector<8x128xf32>
    %cst = arith.constant dense<0.000000e+00> : vector<128x128xf32>
    %18 = tpu.matmul %14, %17, %cst {dimension_numbers = #tpu.dot_dimension_numbers<[1], [0], [0], [1], [0, 0, 1, 1], [], []>, precision = #tpu.contract_precision<fp32>} : vector<128x8xf32>, vector<8x128xf32>, vector<128x128xf32> -> vector<128x128xf32>
    %19 = arith.addf %15, %18 : vector<128x128xf32>
    %c0_8 = arith.constant 0 : index
    %c0_9 = arith.constant 0 : index
    %20 = vector.load %arg9[%c0_8, %c0_9] : memref<128x128xf32, #tpu.memory_space<vmem>>, vector<128x128xf32>
    tpu.vector_store %arg9[%c0_8, %c0_9], %19 {strides = array<i32>} : memref<128x128xf32, #tpu.memory_space<vmem>>, vector<128x128xf32>,
    %c0_10 = arith.constant 0 : index
    %c0_11 = arith.constant 0 : index
    %c0_12 = arith.constant 0 : index
    %21 = vector.load %arg3[%c0_10, %c0_11, %c0_12] : memref<1x128x1xi32, #tpu.memory_space<vmem>>, vector<1x128x1xi32>
    %22 = vector.shape_cast %21 : vector<1x128x1xi32> to vector<128x1xi32>
    %c7_i32_13 = arith.constant 7 : i32
    %23 = vector.broadcast %c7_i32_13 : i32 to vector<128x1xi32>
    %24 = arith.shrsi %22, %23 : vector<128x1xi32>
    %25 = vector.broadcast %3 : i32 to vector<128x1xi32>
    %26 = arith.subi %24, %25 : vector<128x1xi32>
    %27 = vector.broadcast %26 : vector<128x1xi32> to vector<128x8xi32>
    %28 = arith.cmpi eq, %4, %27 : vector<128x8xi32>
    %29 = arith.extui %28 : vector<128x8xi1> to vector<128x8xi32>
    %30 = arith.sitofp %29 : vector<128x8xi32> to vector<128x8xf32>
    %c0_14 = arith.constant 0 : index
    %c0_15 = arith.constant 0 : index
    %31 = vector.load %arg10[%c0_14, %c0_15] : memref<128x128xf32, #tpu.memory_space<vmem>>, vector<128x128xf32>
    %c0_16 = arith.constant 0 : index
    %c0_17 = arith.constant 0 : index
    %c0_18 = arith.constant 0 : index
    %32 = vector.load %arg6[%c0_16, %c0_17, %c0_18] : memref<1x8x128xf32, #tpu.memory_space<vmem>>, vector<1x8x128xf32>
    %33 = vector.shape_cast %32 : vector<1x8x128xf32> to vector<8x128xf32>
    %cst_19 = arith.constant dense<0.000000e+00> : vector<128x128xf32>
    %34 = tpu.matmul %30, %33, %cst_19 {dimension_numbers = #tpu.dot_dimension_numbers<[1], [0], [0], [1], [0, 0, 1, 1], [], []>, precision = #tpu.contract_precision<fp32>} : vector<128x8xf32>, vector<8x128xf32>, vector<128x128xf32> -> vector<128x128xf32>
    %35 = arith.addf %31, %34 : vector<128x128xf32>
    %c0_20 = arith.constant 0 : index
    %c0_21 = arith.constant 0 : index
    %36 = vector.load %arg10[%c0_20, %c0_21] : memref<128x128xf32, #tpu.memory_space<vmem>>, vector<128x128xf32>
    tpu.vector_store %arg10[%c0_20, %c0_21], %35 {strides = array<i32>} : memref<128x128xf32, #tpu.memory_space<vmem>>, vector<128x128xf32>,
    %c0_i32_22 = arith.constant 0 : i32
    %37 = arith.cmpi eq, %arg1, %c0_i32_22 : i32
    %38 = arith.extui %37 : i1 to i32
    %c0_i32_23 = arith.constant 0 : i32
    %39 = arith.cmpi ne, %38, %c0_i32_23 : i32
    scf.if %39 {
      %40 = tpu.iota {dimensions = array<i32: 1>} : vector<128x128xi32>
      %c0_24 = arith.constant 0 : index
      %c0_25 = arith.constant 0 : index
      %c0_26 = arith.constant 0 : index
      %41 = vector.load %arg2[%c0_24, %c0_25, %c0_26] : memref<1x128x1xi32, #tpu.memory_space<vmem>>, vector<1x128x1xi32>
      %42 = vector.shape_cast %41 : vector<1x128x1xi32> to vector<128x1xi32>
      %c127_i32 = arith.constant 127 : i32
      %43 = vector.broadcast %c127_i32 : i32 to vector<128x1xi32>
      %44 = arith.andi %42, %43 : vector<128x1xi32>
      %c0_27 = arith.constant 0 : index
      %c0_28 = arith.constant 0 : index
      %c0_29 = arith.constant 0 : index
      %45 = vector.load %arg3[%c0_27, %c0_28, %c0_29] : memref<1x128x1xi32, #tpu.memory_space<vmem>>, vector<1x128x1xi32>
      %46 = vector.shape_cast %45 : vector<1x128x1xi32> to vector<128x1xi32>
      %c127_i32_30 = arith.constant 127 : i32
      %47 = vector.broadcast %c127_i32_30 : i32 to vector<128x1xi32>
      %48 = arith.andi %46, %47 : vector<128x1xi32>
      %49 = vector.broadcast %44 : vector<128x1xi32> to vector<128x128xi32>
      %50 = arith.cmpi eq, %40, %49 : vector<128x128xi32>
      %c0_31 = arith.constant 0 : index
      %c0_32 = arith.constant 0 : index
      %51 = vector.load %arg9[%c0_31, %c0_32] : memref<128x128xf32, #tpu.memory_space<vmem>>, vector<128x128xf32>
      %cst_33 = arith.constant 0.000000e+00 : f32
      %52 = vector.broadcast %cst_33 : f32 to vector<128x128xf32>
      %53 = arith.select %50, %51, %52 : vector<128x128xi1>, vector<128x128xf32>
      %cst_34 = arith.constant dense<0.000000e+00> : vector<128xf32>
      %54 = vector.multi_reduction <add>, %53, %cst_34 [1] : vector<128x128xf32> to vector<128xf32>
      %55 = vector.shape_cast %54 : vector<128xf32> to vector<128x1xf32>
      %56 = vector.broadcast %48 : vector<128x1xi32> to vector<128x128xi32>
      %57 = arith.cmpi eq, %40, %56 : vector<128x128xi32>
      %c0_35 = arith.constant 0 : index
      %c0_36 = arith.constant 0 : index
      %58 = vector.load %arg10[%c0_35, %c0_36] : memref<128x128xf32, #tpu.memory_space<vmem>>, vector<128x128xf32>
      %cst_37 = arith.constant 0.000000e+00 : f32
      %59 = vector.broadcast %cst_37 : f32 to vector<128x128xf32>
      %60 = arith.select %57, %58, %59 : vector<128x128xi1>, vector<128x128xf32>
      %cst_38 = arith.constant dense<0.000000e+00> : vector<128xf32>
      %61 = vector.multi_reduction <add>, %60, %cst_38 [1] : vector<128x128xf32> to vector<128xf32>
      %62 = vector.shape_cast %61 : vector<128xf32> to vector<128x1xf32>
      %c0_39 = arith.constant 0 : index
      %c0_40 = arith.constant 0 : index
      %c0_41 = arith.constant 0 : index
      %63 = vector.load %arg4[%c0_39, %c0_40, %c0_41] : memref<1x128x1xf32, #tpu.memory_space<vmem>>, vector<1x128x1xf32>
      %64 = vector.shape_cast %63 : vector<1x128x1xf32> to vector<128x1xf32>
      %cst_42 = arith.constant 0.000000e+00 : f32
      %65 = vector.broadcast %cst_42 : f32 to vector<128x1xf32>
      %66 = arith.cmpf one, %64, %65 : vector<128x1xf32>
      %67 = arith.extui %66 : vector<128x1xi1> to vector<128x1xi32>
      %68 = arith.sitofp %67 : vector<128x1xi32> to vector<128x1xf32>
      %cst_43 = arith.constant dense<0.000000e+00> : vector<1xf32>
      %69 = vector.multi_reduction <add>, %64, %cst_43 [0] : vector<128x1xf32> to vector<1xf32>
      %70 = vector.shape_cast %69 : vector<1xf32> to vector<1x1xf32>
      %71 = arith.subf %55, %62 : vector<128x1xf32>
      %72 = arith.mulf %71, %71 : vector<128x1xf32>
      %73 = arith.mulf %72, %68 : vector<128x1xf32>
      %cst_44 = arith.constant dense<0.000000e+00> : vector<1xf32>
      %74 = vector.multi_reduction <add>, %73, %cst_44 [0] : vector<128x1xf32> to vector<1xf32>
      %75 = vector.shape_cast %74 : vector<1xf32> to vector<1x1xf32>
      %cst_45 = arith.constant 5.000000e-01 : f32
      %76 = vector.broadcast %cst_45 : f32 to vector<1x1xf32>
      %77 = arith.mulf %75, %76 : vector<1x1xf32>
      %cst_46 = arith.constant 9.99999974E-5 : f32
      %78 = vector.broadcast %cst_46 : f32 to vector<1x1xf32>
      %79 = arith.addf %70, %78 : vector<1x1xf32>
      %80 = arith.divf %77, %79 : vector<1x1xf32>
      %c0_47 = arith.constant 0 : index
      %c0_48 = arith.constant 0 : index
      %c0_49 = arith.constant 0 : index
      %81 = vector.load %arg7[%c0_47, %c0_48, %c0_49] : memref<1x1x1xf32, #tpu.memory_space<vmem>>, vector<1x1x1xf32>
      %82 = vector.shape_cast %81 : vector<1x1x1xf32> to vector<1x1xf32>
      %83 = vector.shape_cast %80 : vector<1x1xf32> to vector<1x1x1xf32>
      tpu.vector_store %arg7[%c0_47, %c0_48, %c0_49], %83 {strides = array<i32>} : memref<1x1x1xf32, #tpu.memory_space<vmem>>, vector<1x1x1xf32>,
      %84 = arith.addf %55, %62 : vector<128x1xf32>
      %cst_50 = arith.constant 5.000000e-01 : f32
      %85 = vector.broadcast %cst_50 : f32 to vector<128x1xf32>
      %86 = arith.mulf %84, %85 : vector<128x1xf32>
      %87 = tpu.iota {dimensions = array<i32: 0>} : vector<128x128xi32>
      %88 = tpu.iota {dimensions = array<i32: 1>} : vector<128x128xi32>
      %89 = arith.cmpi eq, %87, %88 : vector<128x128xi32>
      %cst_51 = arith.constant 0.000000e+00 : f32
      %90 = vector.shape_cast %86 : vector<128x1xf32> to vector<128x1xf32>
      %91 = vector.broadcast %90 : vector<128x1xf32> to vector<128x128xf32>
      %92 = vector.broadcast %cst_51 : f32 to vector<128x128xf32>
      %93 = arith.select %89, %91, %92 : vector<128x128xi1>, vector<128x128xf32>
      %cst_52 = arith.constant dense<0.000000e+00> : vector<128xf32>
      %94 = vector.multi_reduction <add>, %93, %cst_52 [0] : vector<128x128xf32> to vector<128xf32>
      %95 = vector.shape_cast %94 : vector<128xf32> to vector<1x128xf32>
      %96 = tpu.iota {dimensions = array<i32: 0>} : vector<128x128xi32>
      %97 = tpu.iota {dimensions = array<i32: 1>} : vector<128x128xi32>
      %98 = arith.cmpi eq, %96, %97 : vector<128x128xi32>
      %cst_53 = arith.constant 0.000000e+00 : f32
      %99 = vector.shape_cast %64 : vector<128x1xf32> to vector<128x1xf32>
      %100 = vector.broadcast %99 : vector<128x1xf32> to vector<128x128xf32>
      %101 = vector.broadcast %cst_53 : f32 to vector<128x128xf32>
      %102 = arith.select %98, %100, %101 : vector<128x128xi1>, vector<128x128xf32>
      %cst_54 = arith.constant dense<0.000000e+00> : vector<128xf32>
      %103 = vector.multi_reduction <add>, %102, %cst_54 [0] : vector<128x128xf32> to vector<128xf32>
      %104 = vector.shape_cast %103 : vector<128xf32> to vector<1x128xf32>
      %105 = vector.broadcast %64 : vector<128x1xf32> to vector<128x128xf32>
      %106 = vector.broadcast %104 : vector<1x128xf32> to vector<128x128xf32>
      %107 = arith.addf %105, %106 : vector<128x128xf32>
      %cst_55 = arith.constant 2.000000e+00 : f32
      %108 = vector.broadcast %cst_55 : f32 to vector<128x128xf32>
      %109 = arith.cmpf oeq, %107, %108 : vector<128x128xf32>
      %110 = arith.extui %109 : vector<128x128xi1> to vector<128x128xi32>
      %111 = arith.sitofp %110 : vector<128x128xi32> to vector<128x128xf32>
      %cst_56 = arith.constant 1.000000e+00 : f32
      %112 = vector.broadcast %cst_56 : f32 to vector<1x1xf32>
      %113 = arith.subf %70, %112 : vector<1x1xf32>
      %114 = arith.mulf %113, %70 : vector<1x1xf32>
      %cst_57 = arith.constant 9.99999974E-5 : f32
      %115 = vector.broadcast %cst_57 : f32 to vector<1x1xf32>
      %116 = arith.addf %114, %115 : vector<1x1xf32>
      %cst_58 = arith.constant 1.000000e+00 : f32
      %117 = vector.broadcast %cst_58 : f32 to vector<1x1xf32>
      %118 = arith.divf %117, %116 : vector<1x1xf32>
      %cst_59 = arith.constant 9.99999974E-5 : f32
      %119 = vector.broadcast %cst_59 : f32 to vector<1x1xf32>
      %120 = arith.addf %70, %119 : vector<1x1xf32>
      %cst_60 = arith.constant 1.000000e+00 : f32
      %121 = vector.broadcast %cst_60 : f32 to vector<1x1xf32>
      %122 = arith.divf %121, %120 : vector<1x1xf32>
      %cst_61 = arith.constant 0.000000e+00 : f32
      %123 = vector.broadcast %cst_61 : f32 to vector<1x1xf32>
      %124 = arith.subf %123, %122 : vector<1x1xf32>
      %125 = arith.mulf %124, %118 : vector<1x1xf32>
      %126 = vector.broadcast %95 : vector<1x128xf32> to vector<128x128xf32>
      %127 = vector.broadcast %86 : vector<128x1xf32> to vector<128x128xf32>
      %128 = arith.subf %126, %127 : vector<128x128xf32>
      %129 = math.absf %128 : vector<128x128xf32>
      %cst_62 = arith.constant 1.000000e+00 : f32
      %130 = vector.broadcast %cst_62 : f32 to vector<128x128xf32>
      %131 = arith.subf %130, %129 : vector<128x128xf32>
      %cst_63 = arith.constant 0.000000e+00 : f32
      %132 = vector.broadcast %cst_63 : f32 to vector<128x128xf32>
      %133 = arith.maximumf %131, %132 : vector<128x128xf32>
      %134 = vector.broadcast %118 : vector<1x1xf32> to vector<128x128xf32>
      %135 = arith.mulf %133, %134 : vector<128x128xf32>
      %136 = vector.broadcast %125 : vector<1x1xf32> to vector<128x128xf32>
      %137 = arith.addf %135, %136 : vector<128x128xf32>
      %138 = arith.mulf %137, %111 : vector<128x128xf32>
      %cst_64 = arith.constant dense<0.000000e+00> : vector<128xf32>
      %139 = vector.multi_reduction <add>, %138, %cst_64 [1] : vector<128x128xf32> to vector<128xf32>
      %140 = vector.shape_cast %139 : vector<128xf32> to vector<128x1xf32>
      %cst_65 = arith.constant dense<0.000000e+00> : vector<1xf32>
      %141 = vector.multi_reduction <add>, %140, %cst_65 [0] : vector<128x1xf32> to vector<1xf32>
      %142 = vector.shape_cast %141 : vector<1xf32> to vector<1x1xf32>
      %c0_66 = arith.constant 0 : index
      %c0_67 = arith.constant 0 : index
      %c0_68 = arith.constant 0 : index
      %143 = vector.load %arg8[%c0_66, %c0_67, %c0_68] : memref<1x1x1xf32, #tpu.memory_space<vmem>>, vector<1x1x1xf32>
      %144 = vector.shape_cast %143 : vector<1x1x1xf32> to vector<1x1xf32>
      %145 = vector.shape_cast %142 : vector<1x1xf32> to vector<1x1x1xf32>
      tpu.vector_store %arg8[%c0_66, %c0_67, %c0_68], %145 {strides = array<i32>} : memref<1x1x1xf32, #tpu.memory_space<vmem>>, vector<1x1x1xf32>,
    } else {
    }
    return
  }
  func.func @transform_0(%arg0: i32, %arg1: i32) -> (i32, i32, i32) {
    %c0_i32 = arith.constant 0 : i32
    %c0_i32_0 = arith.constant 0 : i32
    %c0_i32_1 = arith.constant 0 : i32
    return %arg0, %c0_i32, %c0_i32_0 : i32, i32, i32
  }
  func.func @transform_1(%arg0: i32, %arg1: i32) -> (i32, i32, i32) {
    %c0_i32 = arith.constant 0 : i32
    %c0_i32_0 = arith.constant 0 : i32
    %c0_i32_1 = arith.constant 0 : i32
    return %arg0, %c0_i32, %c0_i32_0 : i32, i32, i32
  }
  func.func @transform_2(%arg0: i32, %arg1: i32) -> (i32, i32, i32) {
    %c0_i32 = arith.constant 0 : i32
    %c0_i32_0 = arith.constant 0 : i32
    %c0_i32_1 = arith.constant 0 : i32
    return %arg0, %c0_i32, %c0_i32_0 : i32, i32, i32
  }
  func.func @transform_3(%arg0: i32, %arg1: i32) -> (i32, i32, i32) {
    %c0_i32 = arith.constant 0 : i32
    %c0_i32_0 = arith.constant 0 : i32
    return %arg0, %arg1, %c0_i32 : i32, i32, i32
  }
  func.func @transform_4(%arg0: i32, %arg1: i32) -> (i32, i32, i32) {
    %c0_i32 = arith.constant 0 : i32
    %c0_i32_0 = arith.constant 0 : i32
    return %arg0, %arg1, %c0_i32 : i32, i32, i32
  }
  func.func @transform_5(%arg0: i32, %arg1: i32) -> (i32, i32, i32) {
    %c0_i32 = arith.constant 0 : i32
    %c0_i32_0 = arith.constant 0 : i32
    %c0_i32_1 = arith.constant 0 : i32
    return %arg0, %c0_i32, %c0_i32_0 : i32, i32, i32
  }
  func.func @transform_6(%arg0: i32, %arg1: i32) -> (i32, i32, i32) {
    %c0_i32 = arith.constant 0 : i32
    %c0_i32_0 = arith.constant 0 : i32
    %c0_i32_1 = arith.constant 0 : i32
    return %arg0, %c0_i32, %c0_i32_0 : i32, i32, i32
  }
}

</mosaic_0001>

<bundles_post_ra>
// kernel: tag_loss_2.1
= control target key start
LH: loop header
LB: loop body
LE: loop exit
PB: predicated region body
PF: predicated region fallthrough
CT: control target
= control target key end

     0   :  { %s3541_s21 = smov 0   ;;  %s3543_s22 = smov 0   ;;  %s5105_s0 = inlined_call_operand.vmem [shape: s32[2,128,1], index: 0, kind: input, shape index: {}]   ;;  %s5106_s1 = inlined_call_operand.vmem [shape: s32[2,128,1], index: 1, kind: input, shape index: {}]   ;;  %s5107_s2 = inlined_call_operand.vmem [shape: f32[2,128,1], index: 2, kind: input, shape index: {}]   ;;  %s5108_s3 = inlined_call_operand.vmem [shape: f32[2,8,128], index: 3, kind: input, shape index: {}]   ;;  %s5109_s4 = inlined_call_operand.vmem [shape: f32[2,8,128], index: 4, kind: input, shape index: {}]   ;;  %s5110_s5 = inlined_call_operand.vmem [shape: f32[2,1,1], index: 5, kind: output, shape index: {0}]   ;;  %s5111_s6 = inlined_call_operand.vmem [shape: f32[2,1,1], index: 6, kind: output, shape index: {1}]  }
   0x1   :  { %s3545_s23 = smov 0  }
   0x2 LB: > { %s29_s24 = sadd.s32 1, %s3498_s22  ;;  %p3257_p0 = scmp.ge.s32.totalorder %s3502_s23, 1  ;;  %s3502_s23 = sphi %s3545_s23, %s17_s23   ;;  %s3498_s22 = sphi %s3543_s22, %s5162_s22   ;;  %s3494_s21 = sphi %s3541_s21, %s5161_s21  }
   0x3   : > { %p31_p1 = scmp.ge.s32.totalorder %s29_s24, 2  ;;  %p275_p2 = scmp.lt.s32.totalorder %s3502_s23, 3 }
   0x5   : > { %s5164_s24 = smov (%p31_p1, %s29_s24), 0  ;;  %p276_p3 = pnand %p3257_p0, %p275_p2 }
   0x7   : > { %279 = sbr.rel (%p276_p3) target bundleno = 991 (0x3df), region = 40 }
   0xc   : > { %p330_p4 = scmp.lt.s32.totalorder %s3494_s21, 1  ;;  %v3504_v0 = vmov 0   ;;  %vm566_vm0 = vcmask 64512   ;;  %vm2497_vm6 = vcmask 7168  }
   0xd   : > { %3460 = vset.pattern.permute.xlu2 %v3504_v0  ;;  %3459 = vset.pattern.permute.xlu1 %v3504_v0 }
   0xe   : > { %3458 = vset.pattern.permute.xlu0 %v3504_v0  ;;  %s5166_s21 = smov (!%p330_p4, %s3494_s21), 1 }
   0xf   : > { %s3562_s25 = sshll.u32 %s5166_s21, 7  ;;  %s3264_s8 = sshll.u32 %s5166_s21, 3 }
  0x10   : > { %s3568_s28 = scalar_lea.vmem %s5105_s0, %s3562_s25  ;;  %s3634_s7 = scalar_lea.vmem %s5106_s1, %s3562_s25 }
  0x11   : > { %v3571_v1 = vld [vmem:[%s3568_s28 + $0x20] sm:$0xff]  ;;  %v3574_v2 = vld [vmem:[%s3568_s28 + $0x10] sm:$0xff]  ;;  %v3583_v7 = vld [vmem:[%s3568_s28 + $0x28] sm:$0xff]  ;;  %s351_s11 = scalar_lea.vmem %s5108_s3, %s3264_s8  ;;  %s358_s14 = scalar_lea.vmem %s5109_s4, %s3264_s8 }
  0x12   : > { %v3577_v3 = vld [vmem:[%s3568_s28] sm:$0xff]  ;;  %v424_v4 = vshra.s32 %v3571_v1, 7  ;;  %v422_v5 = vshra.s32 %v3574_v2, 7  ;;  %v3586_v8 = vld [vmem:[%s3568_s28 + $0x18] sm:$0xff]  ;;  %v3589_v9 = vld [vmem:[%s3568_s28 + $0x8] sm:$0xff]  ;;  %v425_v10 = vshra.s32 %v3583_v7, 7  ;;  %s3785_s17 = scalar_lea.vmem %s5107_s2, %s3562_s25  ;;  %s361_s20 = scalar_lea.vmem %s5110_s5, %s5166_s21 }
  0x13   : > { %v420_v6 = vshra.s32 %v3577_v3, 7  ;;  %v423_v11 = vshra.s32 %v3586_v8, 7  ;;  %v421_v12 = vshra.s32 %v3589_v9, 7  ;;  %v3595_v13 = vld [vmem:[%s3568_s28 + $0x40] sm:$0xff]  ;;  %v3598_v14 = vld [vmem:[%s3568_s28 + $0x38] sm:$0xff]  ;;  %v3601_v15 = vld [vmem:[%s3568_s28 + $0x30] sm:$0xff]  ;;  %s364_s27 = scalar_lea.vmem %s5111_s6, %s5166_s21 }
  0x14   : > { %466 = vperm.xlu2 %3460, %v424_v4   ;;  %460 = vperm.xlu1 %3459, %v422_v5   ;;  %v428_v16 = vshra.s32 %v3595_v13, 7  ;;  %v427_v17 = vshra.s32 %v3598_v14, 7  ;;  %v426_v18 = vshra.s32 %v3601_v15, 7  ;;  %v3607_v19 = vld [vmem:[%s3568_s28 + $0x58] sm:$0xff]  ;;  %v3610_v20 = vld [vmem:[%s3568_s28 + $0x50] sm:$0xff]  ;;  %v3613_v21 = vld [vmem:[%s3568_s28 + $0x48] sm:$0xff] }
  0x15   : > { %454 = vperm.xlu0 %3458, %v420_v6   ;;  %v431_v22 = vshra.s32 %v3607_v19, 7  ;;  %v430_v23 = vshra.s32 %v3610_v20, 7  ;;  %v429_v24 = vshra.s32 %v3613_v21, 7  ;;  %v3619_v25 = vld [vmem:[%s3568_s28 + $0x70] sm:$0xff]  ;;  %v3622_v26 = vld [vmem:[%s3568_s28 + $0x68] sm:$0xff]  ;;  %v3625_v27 = vld [vmem:[%s3568_s28 + $0x60] sm:$0xff] }
  0x16   : > { %v434_v28 = vshra.s32 %v3619_v25, 7  ;;  %v433_v29 = vshra.s32 %v3622_v26, 7  ;;  %v432_v30 = vshra.s32 %v3625_v27, 7  ;;  %v3637_v31 = vld [vmem:[%s3634_s7 + $0x8] sm:$0xff]  ;;  %v3640_v32 = vld [vmem:[%s3634_s7] sm:$0xff]  ;;  %v3643_v33 = vld [vmem:[%s3568_s28 + $0x78] sm:$0xff] }
  0x17   : > { %v1275_v34 = vshra.s32 %v3637_v31, 7  ;;  %v1274_v35 = vshra.s32 %v3640_v32, 7  ;;  %v435_v36 = vshra.s32 %v3643_v33, 7  ;;  %v3649_v37 = vld [vmem:[%s3634_s7 + $0x20] sm:$0xff]  ;;  %v3652_v38 = vld [vmem:[%s3634_s7 + $0x18] sm:$0xff]  ;;  %v3655_v39 = vld [vmem:[%s3634_s7 + $0x10] sm:$0xff] }
  0x18   : > { %v1278_v40 = vshra.s32 %v3649_v37, 7  ;;  %v1277_v41 = vshra.s32 %v3652_v38, 7  ;;  %v1276_v42 = vshra.s32 %v3655_v39, 7  ;;  %v3661_v43 = vld [vmem:[%s3634_s7 + $0x38] sm:$0xff]  ;;  %v3664_v44 = vld [vmem:[%s3634_s7 + $0x30] sm:$0xff]  ;;  %v3667_v45 = vld [vmem:[%s3634_s7 + $0x28] sm:$0xff] }
  0x19   : > { %v1281_v46 = vshra.s32 %v3661_v43, 7  ;;  %v1280_v47 = vshra.s32 %v3664_v44, 7  ;;  %v1279_v48 = vshra.s32 %v3667_v45, 7  ;;  %v3673_v49 = vld [vmem:[%s3634_s7 + $0x50] sm:$0xff]  ;;  %v3676_v50 = vld [vmem:[%s3634_s7 + $0x48] sm:$0xff]  ;;  %v3679_v51 = vld [vmem:[%s3634_s7 + $0x40] sm:$0xff] }
  0x1a   : > { %v1284_v52 = vshra.s32 %v3673_v49, 7  ;;  %v1283_v53 = vshra.s32 %v3676_v50, 7  ;;  %v1282_v54 = vshra.s32 %v3679_v51, 7  ;;  %v3685_v55 = vld [vmem:[%s3634_s7 + $0x68] sm:$0xff]  ;;  %v3688_v56 = vld [vmem:[%s3634_s7 + $0x60] sm:$0xff]  ;;  %v3691_v57 = vld [vmem:[%s3634_s7 + $0x58] sm:$0xff] }
  0x1b   : > { %v1287_v58 = vshra.s32 %v3685_v55, 7  ;;  %v1286_v59 = vshra.s32 %v3688_v56, 7  ;;  %v1285_v60 = vshra.s32 %v3691_v57, 7  ;;  %v3703_v61 = vld [vmem:[%s3634_s7 + $0x78] sm:$0xff]  ;;  %v3706_v62 = vld [vmem:[%s3634_s7 + $0x70] sm:$0xff]  ;;  %v565_v63 = vld [vmem:[%s351_s11] sm:$0xff] }
  0x1c   : > { %469 = vperm.xlu2 %3460, %v425_v10   ;;  %463 = vperm.xlu1 %3459, %v423_v11   ;;  %v630_v0 = vand.u32 4294901760, %v565_v63  ;;  %v2129_v4 = vand.u32 127, %v3577_v3  ;;  %v1289_v5 = vshra.s32 %v3703_v61, 7  ;;  %v1288_v6 = vshra.s32 %v3706_v62, 7 }
  0x1d   : > { %457 = vperm.xlu0 %3458, %v421_v12   ;;  %v2131_v3 = vand.u32 127, %v3574_v2 }
  0x1e   : > { %v777_v10 = vsub.f32 %v565_v63, %v630_v0  ;;  %962 = vmatpush.msra.mxu3 %v630_v0  ;;  %631 = vmatpush.msra.mxu0 %v630_v0 }
  0x20   : > { %v778_v11 = vand.u32 4294901760, %v777_v10  ;;  %864 = vmatpush.msra.mxu2 %v777_v10 }
  0x22   : > { %v779_v12 = vsub.f32 %v777_v10, %v778_v11  ;;  %1078 = vmatpush.msrb.mxu0 %v778_v11  ;;  %v2167_v10 = vand.u32 127, %v3664_v44  ;;  %v2165_v11 = vand.u32 127, %v3649_v37 }
  0x24   : > { %478 = vperm.xlu2 %3460, %v428_v16   ;;  %475 = vperm.xlu1 %3459, %v427_v17   ;;  %v780_v16 = vand.u32 4294901760, %v779_v12  ;;  %v2132_v17 = vand.u32 127, %v3586_v8  ;;  %v2133_v8 = vand.u32 127, %v3571_v1  ;;  %v5112_v1 = vlaneseq }
  0x25   : > { %472 = vperm.xlu0 %3458, %v426_v18   ;;  %v2130_v18 = vand.u32 127, %v3589_v9 }
  0x26   : > { %781 = vmatpush.msra.mxu1 %v780_v16  ;;  %v2164_v16 = vand.u32 127, %v3652_v38  ;;  %v2170_v38 = vand.u32 127, %v3676_v50  ;;  %v3794_v50 = vld [vmem:[%s3785_s17 + $0x8] sm:$0xff] }
  0x28   : > { %1160 = vmatpush.msrb.mxu1 %v630_v0 }
  0x2c   : > { %487 = vperm.xlu2 %3460, %v431_v22   ;;  %484 = vperm.xlu1 %3459, %v430_v23   ;;  %v2135_v22 = vand.u32 127, %v3601_v15  ;;  %v2134_v23 = vand.u32 127, %v3583_v7  ;;  %v2136_v7 = vand.u32 127, %v3598_v14  ;;  %v2144_v14 = vand.u32 127, %v3643_v33 }
  0x2d   : > { %481 = vperm.xlu0 %3458, %v429_v24   ;;  %v1418_v24 = vld [vmem:[%s358_s14] sm:$0xff] }
  0x2e   : > { %v1482_v2 = vand.u32 4294901760, %v1418_v24 }
  0x30   : > { %v3722_v9 = vsub.f32 %v1418_v24, %v1482_v2  ;;  %1483 = vmatpush.msrb.mxu2 %v1482_v2  ;;  %v2166_v24 = vand.u32 127, %v3667_v45  ;;  %v2499_v45 = vsel %vm2497_vm6, %v3794_v50, 0.0 }
  0x34   : > { %496 = vperm.xlu2 %3460, %v434_v28   ;;  %493 = vperm.xlu1 %3459, %v433_v29   ;;  %v1630_v28 = vand.u32 4294901760, %v3722_v9  ;;  %v2138_v29 = vand.u32 127, %v3613_v21  ;;  %v3733_v21 = vand.u32 127, %v5112_v1 }
  0x35   : > { %490 = vperm.xlu0 %3458, %v432_v30   ;;  %v2137_v30 = vand.u32 127, %v3595_v13 }
  0x36   : > { %v1631_v15 = vsub.f32 %v3722_v9, %v1630_v28 }
  0x3c   : > { %1310 = vperm.xlu2 %3460, %v1275_v34   ;;  %1307 = vperm.xlu1 %3459, %v1274_v35   ;;  %v1632_v34 = vand.u32 4294901760, %v1631_v15  ;;  %v2141_v35 = vand.u32 127, %v3625_v27  ;;  %v5125_v27 = vmov 0.0  }
  0x3d   : > { %499 = vperm.xlu0 %3458, %v435_v36   ;;  %v2140_v36 = vand.u32 127, %v3607_v19 }
  0x3e   : > { %1633 = vmatpush.msrb.mxu3 %v1632_v34  ;;  %v2173_v34 = vand.u32 127, %v3688_v56 }
  0x44   : > { %1319 = vperm.xlu2 %3460, %v1278_v40   ;;  %1316 = vperm.xlu1 %3459, %v1277_v41   ;;  %v2139_v40 = vand.u32 127, %v3610_v20  ;;  %v2143_v41 = vand.u32 127, %v3619_v25  ;;  %v2142_v20 = vand.u32 127, %v3622_v26 }
  0x45   : > { %1313 = vperm.xlu0 %3458, %v1276_v42  }
  0x4c   : > { %1328 = vperm.xlu2 %3460, %v1281_v46   ;;  %1325 = vperm.xlu1 %3459, %v1280_v47  }
  0x4d   : > { %1322 = vperm.xlu0 %3458, %v1279_v48  }
  0x54   : > { %1337 = vperm.xlu2 %3460, %v1284_v52   ;;  %1334 = vperm.xlu1 %3459, %v1283_v53   ;;  %v2163_v52 = vand.u32 127, %v3655_v39  ;;  %v2162_v53 = vand.u32 127, %v3637_v31 }
  0x55   : > { %1331 = vperm.xlu0 %3458, %v1282_v54  }
  0x5c   : > { %1346 = vperm.xlu2 %3460, %v1287_v58   ;;  %1343 = vperm.xlu1 %3459, %v1286_v59   ;;  %v2161_v59 = vand.u32 127, %v3640_v32 }
  0x5d   : > { %1340 = vperm.xlu0 %3458, %v1285_v60  }
  0x64   : > { %2178 = vperm.xlu2 %3460, %v2129_v4   ;;  %1352 = vperm.xlu1 %3459, %v1289_v5  }
  0x65   : > { %1349 = vperm.xlu0 %3458, %v1288_v6  }
  0x6c   : > { %2187 = vperm.xlu2 %3460, %v2132_v17   ;;  %2184 = vperm.xlu1 %3459, %v2131_v3  }
  0x6d   : > { %2181 = vperm.xlu0 %3458, %v2130_v18  }
  0x6e   : > { %v467_v4 = vpop.permute.xlu2 %466 }
  0x6f   : > { %vm505_vm5 = vcmp.eq.s32.totalorder %v3733_v21, %v467_v4 }
  0x70   : > { %v3777_v18 = vsel %vm505_vm5, 1.0, %v5125_v27 }
  0x74   : > { %2196 = vperm.xlu2 %3460, %v2135_v22   ;;  %2193 = vperm.xlu1 %3459, %v2134_v23   ;;  %v2168_v22 = vand.u32 127, %v3661_v43  ;;  %v580_v43 = vsel %vm566_vm0, %v3777_v18, 0 }
  0x75   : > { %2190 = vperm.xlu0 %3458, %v2133_v8  }
  0x76   : > { %v470_v23 = vpop.permute.xlu2 %469 }
  0x77   : > { %vm506_vm7 = vcmp.eq.s32.totalorder %v3733_v21, %v470_v23  ;;  %v2442_v23 = vld [vmem:[%s3785_s17 + $0x48] sm:$0xff] }
  0x7c   : > { %2205 = vperm.xlu2 %3460, %v2138_v29   ;;  %2202 = vperm.xlu1 %3459, %v2137_v30   ;;  %v665_v29 = vsub.f32 %v580_v43, %v580_v43  ;;  %v3802_v30 = vld [vmem:[%s3785_s17] sm:$0xff]  ;;  %v2515_v43 = vsel %vm2497_vm6, %v2442_v23, 0.0 }
  0x7d   : > { %2199 = vperm.xlu0 %3458, %v2136_v7   ;;  %v2498_v15 = vsel %vm2497_vm6, %v3802_v30, 0.0 }
  0x7e   : > { %v2500_v7 = vadd.f32 %v2499_v45, %v2498_v15 }
  0x84   : > { %2214 = vperm.xlu2 %3460, %v2141_v35   ;;  %2211 = vperm.xlu1 %3459, %v2140_v36   ;;  %v2171_v35 = vand.u32 127, %v3673_v49 }
  0x85   : > { %2208 = vperm.xlu0 %3458, %v2139_v40   ;;  %v2435_v40 = vld [vmem:[%s3785_s17 + $0x10] sm:$0xff] }
  0x86   : > { %v461_v42 = vpop.permute.xlu1 %460 }
  0x87   : > { %v455_v13 = vpop.permute.xlu0 %454  ;;  %vm503_vm2 = vcmp.eq.s32.totalorder %v3733_v21, %v461_v42  ;;  %v666_v42 = vand.u32 4294901760, %v665_v29 }
  0x88   : > { %vm501_vm1 = vcmp.eq.s32.totalorder %v3733_v21, %v455_v13  ;;  %v3748_v33 = vsel %vm503_vm2, 1.0, %v5125_v27 }
  0x89   : > { %v3739_v19 = vsel %vm501_vm1, 1.0, %v5125_v27  ;;  %v574_v63 = vsel %vm566_vm0, %v3748_v33, 0 }
  0x8a   : > { %3282 = vmatmul.msk.f32.vlgmr.msra.gmra.mxu1 %vm566_vm0, %v3739_v19  ;;  %v568_v46 = vsel %vm566_vm0, %v3739_v19, 0  ;;  %v649_v32 = vsub.f32 %v574_v63, %v574_v63  ;;  %v2172_v63 = vand.u32 127, %v3691_v57  ;;  %v2439_v57 = vld [vmem:[%s3785_s17 + $0x30] sm:$0xff] }
  0x8b   : > { %v633_v47 = vsub.f32 %v568_v46, %v568_v46  ;;  %1814 = vmatpush.msra.mxu1 %v1482_v2  ;;  %v667_v46 = vsub.f32 %v665_v29, %v666_v42  ;;  %v2509_v4 = vsel %vm2497_vm6, %v2439_v57, 0.0 }
  0x8c   : > { %2223 = vperm.xlu2 %3460, %v2144_v14   ;;  %2220 = vperm.xlu1 %3459, %v2143_v41   ;;  %v650_v17 = vand.u32 4294901760, %v649_v32  ;;  %v2169_v41 = vand.u32 127, %v3679_v51 }
  0x8d   : > { %2217 = vperm.xlu0 %3458, %v2142_v20   ;;  %867 = vmatmul.f32.vlgmr.msra.gmra.mxu2 %v633_v47  ;;  %v634_v25 = vand.u32 4294901760, %v633_v47  ;;  %v2501_v20 = vsel %vm2497_vm6, %v2435_v40, 0.0 }
  0x8e   : > { %1930 = vmatpush.msra.mxu2 %v1630_v28  ;;  %v464_v0 = vpop.permute.xlu1 %463  ;;  %v651_v44 = vsub.f32 %v649_v32, %v650_v17  ;;  %v2502_v56 = vadd.f32 %v2501_v20, %v2500_v7 }
  0x8f   : > { %966 = vmatmul.f32.vlgmr.msra.gmra.mxu3 %v634_v25  ;;  %v458_v26 = vpop.permute.xlu0 %457  ;;  %v635_v48 = vsub.f32 %v633_v47, %v634_v25  ;;  %vm504_vm4 = vcmp.eq.s32.totalorder %v3733_v21, %v464_v0  ;;  %v3817_v47 = vld [vmem:[%s3785_s17 + $0x18] sm:$0xff] }
  0x90   : > { %vm502_vm3 = vcmp.eq.s32.totalorder %v3733_v21, %v458_v26  ;;  %2012 = vmatpush.msra.mxu3 %v1482_v2  ;;  %v3766_v5 = vsel %vm504_vm4, 1.0, %v5125_v27  ;;  %v652_v8 = vand.u32 4294901760, %v651_v44  ;;  %v2503_v51 = vsel %vm2497_vm6, %v3817_v47, 0.0 }
  0x91   : > { %v3754_v54 = vsel %vm502_vm3, 1.0, %v5125_v27  ;;  %v636_v58 = vand.u32 4294901760, %v635_v48  ;;  %v577_v3 = vsel %vm566_vm0, %v3766_v5, 0  ;;  %v2504_v26 = vadd.f32 %v2503_v51, %v2502_v56 }
  0x92   : > { %3283 = vmatmul.msk.f32.gmra.mxu1 %vm566_vm0, %v3754_v54  ;;  %v571_v60 = vsel %vm566_vm0, %v3754_v54, 0  ;;  %v657_v37 = vsub.f32 %v577_v3, %v577_v3  ;;  %v2176_v48 = vand.u32 127, %v3703_v61 }
  0x93   : > { %637 = vmatmul.f32.vlgmr.msra.gmra.mxu0 %v636_v58  ;;  %v641_v39 = vsub.f32 %v571_v60, %v571_v60  ;;  %v2437_v58 = vld [vmem:[%s3785_s17 + $0x20] sm:$0xff]  ;;  %v668_v60 = vand.u32 4294901760, %v667_v46 }
  0x94   : > { %2312 = vperm.xlu2 %3460, %v2163_v52   ;;  %2309 = vperm.xlu1 %3459, %v2162_v53   ;;  %v658_v2 = vand.u32 4294901760, %v657_v37  ;;  %v2174_v52 = vand.u32 127, %v3685_v55  ;;  %v2505_v0 = vsel %vm2497_vm6, %v2437_v58, 0.0 }
  0x95   : > { %2306 = vperm.xlu0 %3458, %v2161_v59   ;;  %872 = vmatmul.f32.gmra.mxu2 %v641_v39  ;;  %v642_v31 = vand.u32 4294901760, %v641_v39  ;;  %v2506_v61 = vadd.f32 %v2505_v0, %v2504_v26  ;;  %v2446_v26 = vld [vmem:[%s3785_s17 + $0x68] sm:$0xff] }
  0x96   : > { %1716 = vmatpush.msra.mxu0 %v3722_v9  ;;  %v3799_v9 = vsel %vm506_vm7, 1.0, %v5125_v27  ;;  %v659_v28 = vsub.f32 %v657_v37, %v658_v2  ;;  %v476_v59 = vpop.permute.xlu1 %475 }
  0x97   : > { %972 = vmatmul.f32.gmra.mxu3 %v642_v31  ;;  %v643_v6 = vsub.f32 %v641_v39, %v642_v31  ;;  %v583_v36 = vsel %vm566_vm0, %v3799_v9, 0  ;;  %v473_v13 = vpop.permute.xlu0 %472  ;;  %vm508_vm9 = vcmp.eq.s32.totalorder %v3733_v21, %v476_v59 }
  0x98   : > { %v660_v14 = vand.u32 4294901760, %v659_v28  ;;  %vm507_vm8 = vcmp.eq.s32.totalorder %v3733_v21, %v473_v13  ;;  %v673_v49 = vsub.f32 %v583_v36, %v583_v36  ;;  %v2445_v13 = vld [vmem:[%s3785_s17 + $0x60] sm:$0xff] }
  0x99   : > { %v644_v12 = vand.u32 4294901760, %v643_v6  ;;  %v3822_v25 = vsel %vm507_vm8, 1.0, %v5125_v27 }
  0x9a   : > { %3284 = vmatmul.msk.f32.gmra.mxu1 %vm566_vm0, %v3748_v33  ;;  %v674_v53 = vand.u32 4294901760, %v673_v49  ;;  %v586_v39 = vsel %vm566_vm0, %v3822_v25, 0 }
  0x9b   : > { %645 = vmatmul.f32.gmra.mxu0 %v644_v12  ;;  %v681_v31 = vsub.f32 %v586_v39, %v586_v39 }
  0x9c   : > { %2324 = vperm.xlu2 %3460, %v2167_v10   ;;  %2318 = vperm.xlu1 %3459, %v2165_v11   ;;  %v675_v55 = vsub.f32 %v673_v49, %v674_v53  ;;  %v3842_v10 = vsel %vm508_vm9, 1.0, %v5125_v27 }
  0x9d   : > { %2315 = vperm.xlu0 %3458, %v2164_v16   ;;  %877 = vmatmul.f32.gmra.mxu2 %v649_v32  ;;  %v3836_v32 = vld [vmem:[%s3785_s17 + $0x28] sm:$0xff]  ;;  %v2440_v16 = vld [vmem:[%s3785_s17 + $0x38] sm:$0xff]  ;;  %v682_v3 = vand.u32 4294901760, %v681_v31 }
  0x9e   : > { %v2507_v6 = vsel %vm2497_vm6, %v3836_v32, 0.0  ;;  %v676_v12 = vand.u32 4294901760, %v675_v55  ;;  %v2511_v44 = vsel %vm2497_vm6, %v2440_v16, 0.0 }
  0x9f   : > { %978 = vmatmul.f32.gmra.mxu3 %v650_v17  ;;  %v2508_v11 = vadd.f32 %v2507_v6, %v2506_v61  ;;  %v2175_v17 = vand.u32 127, %v3706_v62  ;;  %v3855_v62 = vld [vmem:[%s3785_s17 + $0x40] sm:$0xff] }
  0xa0   : > { %v2513_v45 = vsel %vm2497_vm6, %v3855_v62, 0.0 }
  0xa2   : > { %3285 = vmatmul.msk.f32.gmra.mxu1 %vm566_vm0, %v3766_v5 }
  0xa3   : > { %653 = vmatmul.f32.gmra.mxu0 %v652_v8 }
  0xa4   : > { %2333 = vperm.xlu2 %3460, %v2170_v38   ;;  %2327 = vperm.xlu1 %3459, %v2168_v22   ;;  %v589_v38 = vsel %vm566_vm0, %v3842_v10, 0  ;;  %v479_v22 = vpop.permute.xlu2 %478 }
  0xa5   : > { %2321 = vperm.xlu0 %3458, %v2166_v24   ;;  %882 = vmatmul.f32.gmra.mxu2 %v657_v37  ;;  %v2510_v37 = vadd.f32 %v2509_v4, %v2508_v11  ;;  %vm509_vm10 = vcmp.eq.s32.totalorder %v3733_v21, %v479_v22  ;;  %v683_v24 = vsub.f32 %v681_v31, %v682_v3 }
  0xa7   : > { %984 = vmatmul.f32.gmra.mxu3 %v658_v2  ;;  %v2512_v8 = vadd.f32 %v2511_v44, %v2510_v37  ;;  %v689_v2 = vsub.f32 %v589_v38, %v589_v38 }
  0xa9   : > { %v2514_v28 = vadd.f32 %v2513_v45, %v2512_v8  ;;  %v690_v36 = vand.u32 4294901760, %v689_v2 }
  0xaa   : > { %3286 = vmatmul.msk.f32.gmra.mxu1 %vm566_vm0, %v3777_v18 }
  0xab   : > { %661 = vmatmul.f32.gmra.mxu0 %v660_v14  ;;  %v2516_v7 = vadd.f32 %v2515_v43, %v2514_v28  ;;  %v3871_v14 = vld [vmem:[%s3785_s17 + $0x58] sm:$0xff] }
  0xac   : > { %2342 = vperm.xlu2 %3460, %v2173_v34   ;;  %2336 = vperm.xlu1 %3459, %v2171_v35   ;;  %v482_v34 = vpop.permute.xlu0 %481  ;;  %v684_v35 = vand.u32 4294901760, %v683_v24  ;;  %v2519_v20 = vsel %vm2497_vm6, %v3871_v14, 0.0  ;;  %v488_v11 = vpop.permute.xlu2 %487 }
  0xad   : > { %2330 = vperm.xlu0 %3458, %v2169_v41   ;;  %887 = vmatmul.f32.gmra.mxu2 %v665_v29  ;;  %v3861_v29 = vsel %vm509_vm10, 1.0, %v5125_v27  ;;  %vm510_vm11 = vcmp.eq.s32.totalorder %v3733_v21, %v482_v34  ;;  %vm512_vm13 = vcmp.eq.s32.totalorder %v3733_v21, %v488_v11 }
  0xae   : > { %v3879_v51 = vsel %vm510_vm11, 1.0, %v5125_v27 }
  0xaf   : > { %990 = vmatmul.f32.gmra.mxu3 %v666_v42  ;;  %v2521_v42 = vsel %vm2497_vm6, %v2445_v13, 0.0 }
  0xb2   : > { %3287 = vmatmul.msk.f32.gmra.mxu1 %vm566_vm0, %v3799_v9 }
  0xb3   : > { %669 = vmatmul.f32.gmra.mxu0 %v668_v60  ;;  %v2447_v60 = vld [vmem:[%s3785_s17 + $0x70] sm:$0xff] }
  0xb4   : > { %2351 = vperm.xlu2 %3460, %v2176_v48   ;;  %2345 = vperm.xlu1 %3459, %v2174_v52   ;;  %v2523_v52 = vsel %vm2497_vm6, %v2446_v26, 0.0  ;;  %v2525_v0 = vsel %vm2497_vm6, %v2447_v60, 0.0 }
  0xb5   : > { %2339 = vperm.xlu0 %3458, %v2172_v63   ;;  %892 = vmatmul.f32.gmra.mxu2 %v673_v49  ;;  %v691_v49 = vsub.f32 %v689_v2, %v690_v36 }
  0xb7   : > { %996 = vmatmul.f32.gmra.mxu3 %v674_v53  ;;  %v485_v53 = vpop.permute.xlu1 %484 }
  0xb8   : > { %vm511_vm12 = vcmp.eq.s32.totalorder %v3733_v21, %v485_v53 }
  0xba   : > { %3288 = vmatmul.msk.f32.gmra.mxu1 %vm566_vm0, %v3822_v25 }
  0xbb   : > { %677 = vmatmul.f32.gmra.mxu0 %v676_v12 }
  0xbc   : > { %2748 = vperm.xlu2 %3460, %v3794_v50   ;;  %2753 = vperm.xlu1 %3459, %v2435_v40   ;;  %v2443_v50 = vld [vmem:[%s3785_s17 + $0x50] sm:$0xff]  ;;  %v592_v40 = vsel %vm566_vm0, %v3861_v29, 0 }
  0xbd   : > { %2348 = vperm.xlu0 %3458, %v2175_v17   ;;  %897 = vmatmul.f32.gmra.mxu2 %v681_v31  ;;  %v2517_v15 = vsel %vm2497_vm6, %v2443_v50, 0.0  ;;  %v697_v56 = vsub.f32 %v592_v40, %v592_v40  ;;  %v3894_v31 = vsel %vm511_vm12, 1.0, %v5125_v27  ;;  %v491_v17 = vpop.permute.xlu0 %490 }
  0xbe   : > { %v2518_v41 = vadd.f32 %v2517_v15, %v2516_v7  ;;  %v598_v6 = vsel %vm566_vm0, %v3894_v31, 0  ;;  %vm513_vm14 = vcmp.eq.s32.totalorder %v3733_v21, %v491_v17  ;;  %v497_v7 = vpop.permute.xlu2 %496 }
  0xbf   : > { %1002 = vmatmul.f32.gmra.mxu3 %v682_v3  ;;  %v698_v59 = vand.u32 4294901760, %v697_v56  ;;  %v713_v12 = vsub.f32 %v598_v6, %v598_v6  ;;  %v3912_v22 = vsel %vm513_vm14, 1.0, %v5125_v27  ;;  %vm515_vm1 = vcmp.eq.s32.totalorder %v3733_v21, %v497_v7 }
  0xc0   : > { %v2520_v46 = vadd.f32 %v2519_v20, %v2518_v41 }
  0xc1   : > { %v699_v39 = vsub.f32 %v697_v56, %v698_v59  ;;  %v714_v44 = vand.u32 4294901760, %v713_v12 }
  0xc2   : > { %3289 = vmatmul.msk.f32.gmra.mxu1 %vm566_vm0, %v3842_v10  ;;  %v2522_v48 = vadd.f32 %v2521_v42, %v2520_v46 }
  0xc3   : > { %685 = vmatmul.f32.gmra.mxu0 %v684_v35 }
  0xc4   : > { %2763 = vperm.xlu2 %3460, %v2437_v58   ;;  %2773 = vperm.xlu1 %3459, %v2439_v57   ;;  %v692_v58 = vand.u32 4294901760, %v691_v49  ;;  %v2524_v63 = vadd.f32 %v2523_v52, %v2522_v48  ;;  %v700_v57 = vand.u32 4294901760, %v699_v39 }
  0xc5   : > { %2743 = vperm.xlu0 %3458, %v3802_v30   ;;  %902 = vmatmul.f32.gmra.mxu2 %v689_v2  ;;  %v595_v30 = vsel %vm566_vm0, %v3879_v51, 0  ;;  %v604_v2 = vsel %vm566_vm0, %v3912_v22, 0  ;;  %v500_v40 = vpop.permute.xlu0 %499 }
  0xc6   : > { %v705_v55 = vsub.f32 %v595_v30, %v595_v30  ;;  %v3891_v61 = vadd.f32 %v2525_v0, %v2524_v63  ;;  %v729_v43 = vsub.f32 %v604_v2, %v604_v2  ;;  %vm516_vm2 = vcmp.eq.s32.totalorder %v3733_v21, %v500_v40 }
  0xc7   : > { %1008 = vmatmul.f32.gmra.mxu3 %v690_v36  ;;  %v3929_v36 = vsel %vm515_vm1, 1.0, %v5125_v27 }
  0xc8   : > { %5133 = vst [vmem:[#allocation4_spill] sm:$0xff] %v3891_v61  ;;  %v706_v4 = vand.u32 4294901760, %v705_v55  ;;  %v610_v41 = vsel %vm566_vm0, %v3929_v36, 0 }
  0xc9   : > { %v745_v49 = vsub.f32 %v610_v41, %v610_v41 }
  0xca   : > { %3290 = vmatmul.msk.f32.gmra.mxu1 %vm566_vm0, %v3861_v29 }
  0xcb   : > { %693 = vmatmul.f32.gmra.mxu0 %v692_v58  ;;  %v746_v48 = vand.u32 4294901760, %v745_v49  ;;  %v1311_v58 = vpop.permute.xlu2 %1310 }
  0xcc   : > { %2778 = vperm.xlu2 %3460, %v2440_v16   ;;  %2788 = vperm.xlu1 %3459, %v2442_v23   ;;  %v3903_v16 = vsel %vm512_vm13, 1.0, %v5125_v27  ;;  %v494_v23 = vpop.permute.xlu1 %493  ;;  %vm1355_vm4 = vcmp.eq.s32.totalorder %v3733_v21, %v1311_v58 }
  0xcd   : > { %2758 = vperm.xlu0 %3458, %v3817_v47   ;;  %907 = vmatmul.f32.gmra.mxu2 %v697_v56  ;;  %v707_v47 = vsub.f32 %v705_v55, %v706_v4  ;;  %v601_v37 = vsel %vm566_vm0, %v3903_v16, 0  ;;  %vm514_vm15 = vcmp.eq.s32.totalorder %v3733_v21, %v494_v23  ;;  %v3938_v56 = vsel %vm516_vm2, 1.0, %v5125_v27 }
  0xce   : > { %v721_v38 = vsub.f32 %v601_v37, %v601_v37  ;;  %v3921_v45 = vsel %vm514_vm15, 1.0, %v5125_v27  ;;  %v613_v52 = vsel %vm566_vm0, %v3938_v56, 0  ;;  %v3953_v63 = vsel %vm1355_vm4, 1.0, %v5125_v27 }
  0xcf   : > { %1014 = vmatmul.f32.gmra.mxu3 %v698_v59  ;;  %v708_v3 = vand.u32 4294901760, %v707_v47  ;;  %v607_v15 = vsel %vm566_vm0, %v3921_v45, 0  ;;  %v747_v59 = vsub.f32 %v745_v49, %v746_v48  ;;  %v753_v30 = vsub.f32 %v613_v52, %v613_v52 }
  0xd0   : > { %v722_v24 = vand.u32 4294901760, %v721_v38  ;;  %v737_v35 = vsub.f32 %v607_v15, %v607_v15 }
  0xd1   : > { %v748_v0 = vand.u32 4294901760, %v747_v59  ;;  %v754_v39 = vand.u32 4294901760, %v753_v30 }
  0xd2   : > { %3291 = vmatmul.msk.f32.gmra.mxu1 %vm566_vm0, %v3879_v51 }
  0xd3   : > { %701 = vmatmul.f32.gmra.mxu0 %v700_v57  ;;  %v755_v6 = vsub.f32 %v753_v30, %v754_v39  ;;  %v1320_v40 = vpop.permute.xlu2 %1319 }
  0xd4   : > { %2793 = vperm.xlu2 %3460, %v2443_v50   ;;  %2803 = vperm.xlu1 %3459, %v2445_v13   ;;  %v730_v50 = vand.u32 4294901760, %v729_v43  ;;  %v1308_v42 = vpop.permute.xlu1 %1307  ;;  %vm1358_vm8 = vcmp.eq.s32.totalorder %v3733_v21, %v1320_v40 }
  0xd5   : > { %2768 = vperm.xlu0 %3458, %v3836_v32   ;;  %912 = vmatmul.f32.gmra.mxu2 %v705_v55  ;;  %v715_v32 = vsub.f32 %v713_v12, %v714_v44  ;;  %vm1354_vm3 = vcmp.eq.s32.totalorder %v3733_v21, %v1308_v42  ;;  %v1314_v55 = vpop.permute.xlu0 %1313 }
  0xd6   : > { %v731_v34 = vsub.f32 %v729_v43, %v730_v50  ;;  %v3941_v46 = vsel %vm1354_vm3, 1.0, %v5125_v27  ;;  %vm1356_vm5 = vcmp.eq.s32.totalorder %v3733_v21, %v1314_v55 }
  0xd7   : > { %1020 = vmatmul.f32.gmra.mxu3 %v706_v4  ;;  %v716_v8 = vand.u32 4294901760, %v715_v32  ;;  %v1420_v53 = vsel %vm566_vm0, %v3941_v46, 0  ;;  %v1423_v4 = vsel %vm566_vm0, %v3953_v63, 0  ;;  %v3967_v17 = vsel %vm1356_vm5, 1.0, %v5125_v27 }
  0xd8   : > { %v732_v13 = vand.u32 4294901760, %v731_v34  ;;  %v3961_v11 = vsub.f32 %v1423_v4, %v1423_v4 }
  0xda   : > { %3292 = vmatmul.msk.f32.gmra.mxu1 %vm566_vm0, %v3894_v31  ;;  %v5127_v32 = vand.u32 4294901760, %v3961_v11 }
  0xdb   : > { %709 = vmatmul.f32.gmra.mxu0 %v708_v3  ;;  %v756_v3 = vand.u32 4294901760, %v755_v6 }
  0xdc   : > { %2808 = vperm.xlu2 %3460, %v2446_v26  }
  0xdd   : > { %2783 = vperm.xlu0 %3458, %v3855_v62   ;;  %917 = vmatmul.f32.gmra.mxu2 %v713_v12  ;;  %v723_v62 = vsub.f32 %v721_v38, %v722_v24  ;;  %v1323_v52 = vpop.permute.xlu0 %1322 }
  0xde   : > { %vm1359_vm9 = vcmp.eq.s32.totalorder %v3733_v21, %v1323_v52 }
  0xdf   : > { %1026 = vmatmul.f32.gmra.mxu3 %v714_v44  ;;  %v724_v28 = vand.u32 4294901760, %v723_v62  ;;  %v1317_v44 = vpop.permute.xlu1 %1316 }
  0xe0   : > { %vm1357_vm7 = vcmp.eq.s32.totalorder %v3733_v21, %v1317_v44 }
  0xe2   : > { %3293 = vmatmul.msk.f32.gmra.mxu1 %vm566_vm0, %v3903_v16 }
  0xe3   : > { %717 = vmatmul.f32.gmra.mxu0 %v716_v8 }
  0xe5   : > { %2798 = vperm.xlu0 %3458, %v3871_v14   ;;  %922 = vmatmul.f32.gmra.mxu2 %v721_v38  ;;  %v738_v14 = vand.u32 4294901760, %v737_v35  ;;  %v1426_v38 = vsel %vm566_vm0, %v3967_v17, 0 }
  0xe6   : > { %v3975_v23 = vsub.f32 %v1426_v38, %v1426_v38 }
  0xe7   : > { %1032 = vmatmul.f32.gmra.mxu3 %v722_v24  ;;  %v739_v20 = vsub.f32 %v737_v35, %v738_v14  ;;  %v1495_v24 = vsub.f32 %v3961_v11, %v5127_v32  ;;  %v1326_v44 = vpop.permute.xlu1 %1325 }
  0xe8   : > { %v5124_v34 = vand.u32 4294901760, %v3975_v23  ;;  %vm1360_vm10 = vcmp.eq.s32.totalorder %v3733_v21, %v1326_v44 }
  0xe9   : > { %v740_v26 = vand.u32 4294901760, %v739_v20  ;;  %v1496_v7 = vand.u32 4294901760, %v1495_v24 }
  0xea   : > { %3294 = vmatmul.msk.f32.gmra.mxu1 %vm566_vm0, %v3912_v22 }
  0xeb   : > { %725 = vmatmul.f32.gmra.mxu0 %v724_v28 }
  0xed   : > { %2813 = vperm.xlu0 %3458, %v2447_v60   ;;  %927 = vmatmul.f32.gmra.mxu2 %v729_v43  ;;  %v3950_v60 = vsub.f32 %v1420_v53, %v1420_v53  ;;  %v3983_v43 = vsel %vm1357_vm7, 1.0, %v5125_v27 }
  0xef   : > { %1038 = vmatmul.f32.gmra.mxu3 %v730_v50  ;;  %v5130_v57 = vand.u32 4294901760, %v3950_v60 }
  0xf1   : > { %v1487_v12 = vsub.f32 %v3950_v60, %v5130_v57 }
  0xf2   : > { %3295 = vmatmul.msk.f32.gmra.mxu1 %vm566_vm0, %v3921_v45 }
  0xf3   : > { %733 = vmatmul.f32.gmra.mxu0 %v732_v13  ;;  %v1488_v37 = vand.u32 4294901760, %v1487_v12 }
  0xf5   : > { %932 = vmatmul.f32.gmra.mxu2 %v737_v35  ;;  %v1429_v35 = vsel %vm566_vm0, %v3983_v43, 0 }
  0xf7   : > { %1044 = vmatmul.f32.gmra.mxu3 %v738_v14  ;;  %v3995_v14 = vsub.f32 %v1429_v35, %v1429_v35 }
  0xf9   : > { %v5122_v59 = vand.u32 4294901760, %v3995_v14 }
  0xfa   : > { %3296 = vmatmul.msk.f32.gmra.mxu1 %vm566_vm0, %v3929_v36 }
  0xfb   : > { %741 = vmatmul.f32.gmra.mxu0 %v740_v26 }
  0xfd   : > { %937 = vmatmul.f32.gmra.mxu2 %v745_v49  ;;  %v4003_v49 = vsel %vm1358_vm8, 1.0, %v5125_v27 }
  0xff   : > { %1050 = vmatmul.f32.gmra.mxu3 %v746_v48 }
 0x102   : > { %3297 = vmatmul.msk.f32.gmra.mxu1 %vm566_vm0, %v3938_v56 }
 0x103   : > { %749 = vmatmul.f32.gmra.mxu0 %v748_v0 }
 0x105   : > { %942 = vmatmul.f32.gmra.mxu2 %v753_v30  ;;  %v1432_v30 = vsel %vm566_vm0, %v4003_v49, 0 }
 0x107   : > { %v784_v47 = vpop.f32.mrf.mxu1  ;;  %1056 = vmatmul.f32.gmra.mxu3 %v754_v39  ;;  %v4015_v39 = vsub.f32 %v1432_v30, %v1432_v30 }
 0x10a   : > { %3314 = vmatmul.msk.f32.vlgmr.msrb.gmra.mxu1 %vm566_vm0, %v3739_v19 }
 0x10b   : > { %757 = vmatmul.f32.gmra.mxu0 %v756_v3 }
 0x10d   : > { %1489 = vmatmul.f32.vlgmr.msrb.gmra.mxu2 %v1488_v37 }
 0x10f   : > { %v788_v8 = vpop.f32.mrf.mxu1  ;;  %3346 = vmatmul.msk.f32.vlgmr.msrb.gmra.mxu3 %vm566_vm0, %v3941_v46 }
 0x110   : > { %v638_v2 = vpop.f32.mrf.mxu0  ;;  %v868_v62 = vpop.f32.mrf.mxu2 }
 0x111   : > { %v785_v28 = vadd.f32 %v784_v47, %v638_v2  ;;  %v4023_v47 = vsel %vm1359_vm9, 1.0, %v5125_v27 }
 0x112   : > { %v967_v50 = vpop.f32.mrf.mxu3  ;;  %3315 = vmatmul.msk.f32.gmra.mxu1 %vm566_vm0, %v3754_v54  ;;  %v1435_v24 = vsel %vm566_vm0, %v4023_v47, 0 }
 0x113   : > { %v869_v15 = vadd.f32 %v868_v62, %v785_v28  ;;  %3298 = vmatmul.msk.f32.vlgmr.msrb.gmra.mxu0 %vm566_vm0, %v3739_v19  ;;  %v1503_v19 = vsub.f32 %v3975_v23, %v5124_v34  ;;  %v4035_v62 = vsub.f32 %v1435_v24, %v1435_v24 }
 0x115   : > { %v3992_v13 = vadd.f32 %v967_v50, %v869_v15  ;;  %1497 = vmatmul.f32.gmra.mxu2 %v1496_v7  ;;  %v1504_v58 = vand.u32 4294901760, %v1503_v19  ;;  %v4043_v7 = vsel %vm1360_vm10, 1.0, %v5125_v27 }
 0x117   : > { %v792_v41 = vpop.f32.mrf.mxu1  ;;  %3347 = vmatmul.msk.f32.gmra.mxu3 %vm566_vm0, %v3953_v63 }
 0x118   : > { %v646_v42 = vpop.f32.mrf.mxu0  ;;  %v873_v20 = vpop.f32.mrf.mxu2 }
 0x119   : > { %v789_v26 = vadd.f32 %v788_v8, %v646_v42  ;;  %v5120_v8 = vand.u32 4294901760, %v4015_v39 }
 0x11a   : > { %v973_v48 = vpop.f32.mrf.mxu3  ;;  %3316 = vmatmul.msk.f32.gmra.mxu1 %vm566_vm0, %v3748_v33 }
 0x11b   : > { %v874_v53 = vadd.f32 %v873_v20, %v789_v26  ;;  %3299 = vmatmul.msk.f32.gmra.mxu0 %vm566_vm0, %v3754_v54  ;;  %v1511_v54 = vsub.f32 %v3995_v14, %v5122_v59  ;;  %v5119_v20 = vand.u32 4294901760, %v4035_v62  ;;  %v1438_v26 = vsel %vm566_vm0, %v4043_v7, 0 }
 0x11c   : > { %v4055_v52 = vsub.f32 %v1438_v26, %v1438_v26 }
 0x11d   : > { %v4012_v0 = vadd.f32 %v973_v48, %v874_v53  ;;  %1505 = vmatmul.f32.gmra.mxu2 %v1504_v58  ;;  %v1512_v38 = vand.u32 4294901760, %v1511_v54 }
 0x11e   : > { %v5117_v44 = vand.u32 4294901760, %v4055_v52 }
 0x11f   : > { %v796_v55 = vpop.f32.mrf.mxu1  ;;  %3348 = vmatmul.msk.f32.gmra.mxu3 %vm566_vm0, %v3967_v17 }
 0x120   : > { %v654_v4 = vpop.f32.mrf.mxu0  ;;  %v878_v6 = vpop.f32.mrf.mxu2 }
 0x121   : > { %v793_v12 = vadd.f32 %v792_v41, %v654_v4  ;;  %v1329_v41 = vpop.permute.xlu2 %1328 }
 0x122   : > { %v979_v3 = vpop.f32.mrf.mxu3  ;;  %3317 = vmatmul.msk.f32.gmra.mxu1 %vm566_vm0, %v3766_v5  ;;  %vm1361_vm11 = vcmp.eq.s32.totalorder %v3733_v21, %v1329_v41  ;;  %v1335_v41 = vpop.permute.xlu1 %1334 }
 0x123   : > { %v879_v37 = vadd.f32 %v878_v6, %v793_v12  ;;  %3300 = vmatmul.msk.f32.gmra.mxu0 %vm566_vm0, %v3748_v33  ;;  %v1519_v33 = vsub.f32 %v4015_v39, %v5120_v8  ;;  %v1332_v6 = vpop.permute.xlu0 %1331  ;;  %vm1363_vm13 = vcmp.eq.s32.totalorder %v3733_v21, %v1335_v41 }
 0x124   : > { %vm1362_vm12 = vcmp.eq.s32.totalorder %v3733_v21, %v1332_v6  ;;  %v4103_v6 = vsel %vm1363_vm13, 1.0, %v5125_v27 }
 0x125   : > { %v4032_v2 = vadd.f32 %v979_v3, %v879_v37  ;;  %1513 = vmatmul.f32.gmra.mxu2 %v1512_v38  ;;  %v1520_v42 = vand.u32 4294901760, %v1519_v33 }
 0x127   : > { %v800_v28 = vpop.f32.mrf.mxu1  ;;  %3349 = vmatmul.msk.f32.gmra.mxu3 %vm566_vm0, %v3983_v43 }
 0x128   : > { %v662_v50 = vpop.f32.mrf.mxu0  ;;  %v883_v15 = vpop.f32.mrf.mxu2 }
 0x129   : > { %v797_v35 = vadd.f32 %v796_v55, %v662_v50  ;;  %v4063_v55 = vsel %vm1361_vm11, 1.0, %v5125_v27 }
 0x12a   : > { %v985_v40 = vpop.f32.mrf.mxu3  ;;  %3318 = vmatmul.msk.f32.gmra.mxu1 %vm566_vm0, %v3777_v18  ;;  %v1441_v37 = vsel %vm566_vm0, %v4063_v55, 0 }
 0x12b   : > { %v884_v19 = vadd.f32 %v883_v15, %v797_v35  ;;  %3301 = vmatmul.msk.f32.gmra.mxu0 %vm566_vm0, %v3766_v5  ;;  %v1527_v5 = vsub.f32 %v4035_v62, %v5119_v20  ;;  %v4075_v24 = vsub.f32 %v1441_v37, %v1441_v37  ;;  %v4083_v15 = vsel %vm1362_vm12, 1.0, %v5125_v27  ;;  %v1338_v37 = vpop.permute.xlu2 %1337 }
 0x12c   : > { %vm1364_vm14 = vcmp.eq.s32.totalorder %v3733_v21, %v1338_v37 }
 0x12d   : > { %v4052_v48 = vadd.f32 %v985_v40, %v884_v19  ;;  %1521 = vmatmul.f32.gmra.mxu2 %v1520_v42  ;;  %v1528_v3 = vand.u32 4294901760, %v1527_v5  ;;  %v5116_v26 = vand.u32 4294901760, %v4075_v24  ;;  %v1444_v5 = vsel %vm566_vm0, %v4083_v15, 0 }
 0x12f   : > { %v804_v53 = vpop.f32.mrf.mxu1  ;;  %3350 = vmatmul.msk.f32.gmra.mxu3 %vm566_vm0, %v4003_v49 }
 0x130   : > { %v670_v58 = vpop.f32.mrf.mxu0  ;;  %v888_v30 = vpop.f32.mrf.mxu2 }
 0x131   : > { %v801_v54 = vadd.f32 %v800_v28, %v670_v58 }
 0x132   : > { %v991_v4 = vpop.f32.mrf.mxu3  ;;  %3319 = vmatmul.msk.f32.gmra.mxu1 %vm566_vm0, %v3799_v9 }
 0x133   : > { %v889_v12 = vadd.f32 %v888_v30, %v801_v54  ;;  %3302 = vmatmul.msk.f32.gmra.mxu0 %vm566_vm0, %v3777_v18  ;;  %v1535_v18 = vsub.f32 %v4055_v52, %v5117_v44 }
 0x135   : > { %v4072_v38 = vadd.f32 %v991_v4, %v889_v12  ;;  %1529 = vmatmul.f32.gmra.mxu2 %v1528_v3  ;;  %v1536_v42 = vand.u32 4294901760, %v1535_v18 }
 0x137   : > { %v808_v28 = vpop.f32.mrf.mxu1  ;;  %3351 = vmatmul.msk.f32.gmra.mxu3 %vm566_vm0, %v4023_v47 }
 0x138   : > { %v678_v33 = vpop.f32.mrf.mxu0  ;;  %v893_v50 = vpop.f32.mrf.mxu2 }
 0x139   : > { %v805_v35 = vadd.f32 %v804_v53, %v678_v33  ;;  %v4095_v53 = vsub.f32 %v1444_v5, %v1444_v5  ;;  %v4123_v5 = vsel %vm1364_vm14, 1.0, %v5125_v27 }
 0x13a   : > { %v997_v40 = vpop.f32.mrf.mxu3  ;;  %3320 = vmatmul.msk.f32.gmra.mxu1 %vm566_vm0, %v3822_v25 }
 0x13b   : > { %v894_v19 = vadd.f32 %v893_v50, %v805_v35  ;;  %3303 = vmatmul.msk.f32.gmra.mxu0 %vm566_vm0, %v3799_v9  ;;  %v1543_v9 = vsub.f32 %v4075_v24, %v5116_v26  ;;  %v5114_v50 = vand.u32 4294901760, %v4095_v53  ;;  %v1447_v35 = vsel %vm566_vm0, %v4103_v6, 0 }
 0x13d   : > { %v4092_v58 = vadd.f32 %v997_v40, %v894_v19  ;;  %1537 = vmatmul.f32.gmra.mxu2 %v1536_v42  ;;  %v1544_v33 = vand.u32 4294901760, %v1543_v9 }
 0x13f   : > { %v812_v30 = vpop.f32.mrf.mxu1  ;;  %3352 = vmatmul.msk.f32.gmra.mxu3 %vm566_vm0, %v4043_v7 }
 0x140   : > { %v686_v54 = vpop.f32.mrf.mxu0  ;;  %v898_v4 = vpop.f32.mrf.mxu2 }
 0x141   : > { %v809_v12 = vadd.f32 %v808_v28, %v686_v54  ;;  %v4115_v28 = vsub.f32 %v1447_v35, %v1447_v35 }
 0x142   : > { %v1003_v3 = vpop.f32.mrf.mxu3  ;;  %3321 = vmatmul.msk.f32.gmra.mxu1 %vm566_vm0, %v3842_v10 }
 0x143   : > { %v899_v18 = vadd.f32 %v898_v4, %v809_v12  ;;  %3304 = vmatmul.msk.f32.gmra.mxu0 %vm566_vm0, %v3822_v25  ;;  %v1551_v25 = vsub.f32 %v4095_v53, %v5114_v50  ;;  %v1341_v4 = vpop.permute.xlu0 %1340  ;;  %v5113_v37 = vand.u32 4294901760, %v4115_v28 }
 0x144   : > { %vm1365_vm15 = vcmp.eq.s32.totalorder %v3733_v21, %v1341_v4  ;;  %v1344_v4 = vpop.permute.xlu1 %1343 }
 0x145   : > { %v4112_v40 = vadd.f32 %v1003_v3, %v899_v18  ;;  %1545 = vmatmul.f32.gmra.mxu2 %v1544_v33  ;;  %v1552_v3 = vand.u32 4294901760, %v1551_v25  ;;  %v1450_v18 = vsel %vm566_vm0, %v4123_v5, 0  ;;  %vm1366_vm1 = vcmp.eq.s32.totalorder %v3733_v21, %v1344_v4 }
 0x147   : > { %v816_v41 = vpop.f32.mrf.mxu1  ;;  %3353 = vmatmul.msk.f32.gmra.mxu3 %vm566_vm0, %v4063_v55 }
 0x148   : > { %v694_v19 = vpop.f32.mrf.mxu0  ;;  %v903_v42 = vpop.f32.mrf.mxu2 }
 0x149   : > { %v813_v9 = vadd.f32 %v812_v30, %v694_v19  ;;  %v4135_v30 = vsub.f32 %v1450_v18, %v1450_v18 }
 0x14a   : > { %v1009_v54 = vpop.f32.mrf.mxu3  ;;  %3322 = vmatmul.msk.f32.gmra.mxu1 %vm566_vm0, %v3861_v29 }
 0x14b   : > { %v904_v12 = vadd.f32 %v903_v42, %v813_v9  ;;  %3305 = vmatmul.msk.f32.gmra.mxu0 %vm566_vm0, %v3842_v10  ;;  %v1559_v10 = vsub.f32 %v4115_v28, %v5113_v37  ;;  %v4143_v42 = vsel %vm1365_vm15, 1.0, %v5125_v27  ;;  %v5115_v18 = vand.u32 4294901760, %v4135_v30 }
 0x14c   : > { %v1453_v1 = vsel %vm566_vm0, %v4143_v42, 0 }
 0x14d   : > { %v4132_v33 = vadd.f32 %v1009_v54, %v904_v12  ;;  %1553 = vmatmul.f32.gmra.mxu2 %v1552_v3  ;;  %v1560_v3 = vand.u32 4294901760, %v1559_v10 }
 0x14f   : > { %v820_v35 = vpop.f32.mrf.mxu1  ;;  %3354 = vmatmul.msk.f32.gmra.mxu3 %vm566_vm0, %v4083_v15 }
 0x150   : > { %v702_v25 = vpop.f32.mrf.mxu0  ;;  %v908_v19 = vpop.f32.mrf.mxu2 }
 0x151   : > { %v817_v9 = vadd.f32 %v816_v41, %v702_v25  ;;  %v4155_v41 = vsub.f32 %v1453_v1, %v1453_v1  ;;  %v1347_v1 = vpop.permute.xlu2 %1346 }
 0x152   : > { %v1015_v54 = vpop.f32.mrf.mxu3  ;;  %3323 = vmatmul.msk.f32.gmra.mxu1 %vm566_vm0, %v3879_v51  ;;  %vm1367_vm2 = vcmp.eq.s32.totalorder %v3733_v21, %v1347_v1 }
 0x153   : > { %v909_v12 = vadd.f32 %v908_v19, %v817_v9  ;;  %3306 = vmatmul.msk.f32.gmra.mxu0 %vm566_vm0, %v3861_v29  ;;  %v1567_v29 = vsub.f32 %v4135_v30, %v5115_v18  ;;  %v4163_v9 = vsel %vm1366_vm1, 1.0, %v5125_v27  ;;  %v5118_v50 = vand.u32 4294901760, %v4155_v41 }
 0x154   : > { %v1456_v18 = vsel %vm566_vm0, %v4163_v9, 0 }
 0x155   : > { %v4152_v37 = vadd.f32 %v1015_v54, %v909_v12  ;;  %1561 = vmatmul.f32.gmra.mxu2 %v1560_v3  ;;  %v1568_v3 = vand.u32 4294901760, %v1567_v29 }
 0x157   : > { %v824_v25 = vpop.f32.mrf.mxu1  ;;  %3355 = vmatmul.msk.f32.gmra.mxu3 %vm566_vm0, %v4103_v6 }
 0x158   : > { %v710_v10 = vpop.f32.mrf.mxu0  ;;  %v913_v19 = vpop.f32.mrf.mxu2 }
 0x159   : > { %v821_v54 = vadd.f32 %v820_v35, %v710_v10  ;;  %v4175_v35 = vsub.f32 %v1456_v18, %v1456_v18  ;;  %v1350_v18 = vpop.permute.xlu0 %1349 }
 0x15a   : > { %v1021_v12 = vpop.f32.mrf.mxu3  ;;  %3324 = vmatmul.msk.f32.gmra.mxu1 %vm566_vm0, %v3894_v31  ;;  %vm1368_vm3 = vcmp.eq.s32.totalorder %v3733_v21, %v1350_v18 }
 0x15b   : > { %v914_v4 = vadd.f32 %v913_v19, %v821_v54  ;;  %3307 = vmatmul.msk.f32.gmra.mxu0 %vm566_vm0, %v3879_v51  ;;  %v1575_v51 = vsub.f32 %v4155_v41, %v5118_v50  ;;  %v4183_v54 = vsel %vm1367_vm2, 1.0, %v5125_v27  ;;  %v5121_v44 = vand.u32 4294901760, %v4175_v35 }
 0x15c   : > { %v1459_v50 = vsel %vm566_vm0, %v4183_v54, 0 }
 0x15d   : > { %v4172_v26 = vadd.f32 %v1021_v12, %v914_v4  ;;  %1569 = vmatmul.f32.gmra.mxu2 %v1568_v3  ;;  %v1576_v3 = vand.u32 4294901760, %v1575_v51 }
 0x15f   : > { %v828_v10 = vpop.f32.mrf.mxu1  ;;  %3356 = vmatmul.msk.f32.gmra.mxu3 %vm566_vm0, %v4123_v5 }
 0x160   : > { %v718_v29 = vpop.f32.mrf.mxu0  ;;  %v918_v19 = vpop.f32.mrf.mxu2 }
 0x161   : > { %v825_v12 = vadd.f32 %v824_v25, %v718_v29  ;;  %v4195_v25 = vsub.f32 %v1459_v50, %v1459_v50  ;;  %v1353_v50 = vpop.permute.xlu1 %1352 }
 0x162   : > { %v1027_v4 = vpop.f32.mrf.mxu3  ;;  %3325 = vmatmul.msk.f32.gmra.mxu1 %vm566_vm0, %v3903_v16  ;;  %vm1369_vm4 = vcmp.eq.s32.totalorder %v3733_v21, %v1353_v50 }
 0x163   : > { %v919_v1 = vadd.f32 %v918_v19, %v825_v12  ;;  %3308 = vmatmul.msk.f32.gmra.mxu0 %vm566_vm0, %v3894_v31  ;;  %v1583_v31 = vsub.f32 %v4175_v35, %v5121_v44  ;;  %v4203_v12 = vsel %vm1368_vm3, 1.0, %v5125_v27  ;;  %v5123_v8 = vand.u32 4294901760, %v4195_v25 }
 0x164   : > { %v1462_v44 = vsel %vm566_vm0, %v4203_v12, 0 }
 0x165   : > { %v4192_v20 = vadd.f32 %v1027_v4, %v919_v1  ;;  %1577 = vmatmul.f32.gmra.mxu2 %v1576_v3  ;;  %v1584_v3 = vand.u32 4294901760, %v1583_v31 }
 0x167   : > { %v832_v29 = vpop.f32.mrf.mxu1  ;;  %3357 = vmatmul.msk.f32.gmra.mxu3 %vm566_vm0, %v4143_v42 }
 0x168   : > { %v726_v51 = vpop.f32.mrf.mxu0  ;;  %v923_v19 = vpop.f32.mrf.mxu2 }
 0x169   : > { %v829_v4 = vadd.f32 %v828_v10, %v726_v51  ;;  %v4215_v10 = vsub.f32 %v1462_v44, %v1462_v44 }
 0x16a   : > { %v1033_v1 = vpop.f32.mrf.mxu3  ;;  %3326 = vmatmul.msk.f32.gmra.mxu1 %vm566_vm0, %v3912_v22 }
 0x16b   : > { %v924_v18 = vadd.f32 %v923_v19, %v829_v4  ;;  %3309 = vmatmul.msk.f32.gmra.mxu0 %vm566_vm0, %v3903_v16  ;;  %v1591_v16 = vsub.f32 %v4195_v25, %v5123_v8  ;;  %v4223_v4 = vsel %vm1369_vm4, 1.0, %v5125_v27 }
 0x16c   : > { %v1465_v8 = vsel %vm566_vm0, %v4223_v4, 0 }
 0x16d   : > { %v4212_v59 = vadd.f32 %v1033_v1, %v924_v18  ;;  %1585 = vmatmul.f32.gmra.mxu2 %v1584_v3  ;;  %v1592_v50 = vand.u32 4294901760, %v1591_v16  ;;  %v5128_v3 = vand.u32 4294901760, %v4215_v10  ;;  %v4234_v27 = vsub.f32 %v1465_v8, %v1465_v8 }
 0x16f   : > { %v836_v51 = vpop.f32.mrf.mxu1  ;;  %3358 = vmatmul.msk.f32.gmra.mxu3 %vm566_vm0, %v4163_v9 }
 0x170   : > { %v734_v31 = vpop.f32.mrf.mxu0  ;;  %v928_v19 = vpop.f32.mrf.mxu2 }
 0x171   : > { %v833_v1 = vadd.f32 %v832_v29, %v734_v31  ;;  %v1599_v31 = vsub.f32 %v4215_v10, %v5128_v3 }
 0x172   : > { %v1039_v18 = vpop.f32.mrf.mxu3  ;;  %3327 = vmatmul.msk.f32.gmra.mxu1 %vm566_vm0, %v3921_v45 }
 0x173   : > { %v929_v44 = vadd.f32 %v928_v19, %v833_v1  ;;  %3310 = vmatmul.msk.f32.gmra.mxu0 %vm566_vm0, %v3912_v22  ;;  %v1600_v8 = vand.u32 4294901760, %v1599_v31 }
 0x175   : > { %v4232_v34 = vadd.f32 %v1039_v18, %v929_v44  ;;  %1593 = vmatmul.f32.gmra.mxu2 %v1592_v50  ;;  %v5129_v44 = vand.u32 4294901760, %v4234_v27 }
 0x177   : > { %v840_v29 = vpop.f32.mrf.mxu1  ;;  %3359 = vmatmul.msk.f32.gmra.mxu3 %vm566_vm0, %v4183_v54 }
 0x178   : > { %v742_v22 = vpop.f32.mrf.mxu0  ;;  %v933_v16 = vpop.f32.mrf.mxu2 }
 0x179   : > { %v837_v19 = vadd.f32 %v836_v51, %v742_v22  ;;  %v1607_v51 = vsub.f32 %v4234_v27, %v5129_v44 }
 0x17a   : > { %v1045_v1 = vpop.f32.mrf.mxu3  ;;  %3328 = vmatmul.msk.f32.gmra.mxu1 %vm566_vm0, %v3929_v36 }
 0x17b   : > { %v934_v18 = vadd.f32 %v933_v16, %v837_v19  ;;  %3311 = vmatmul.msk.f32.gmra.mxu0 %vm566_vm0, %v3921_v45  ;;  %v1608_v31 = vand.u32 4294901760, %v1607_v51 }
 0x17d   : > { %v4246_v50 = vadd.f32 %v1045_v1, %v934_v18  ;;  %1601 = vmatmul.f32.gmra.mxu2 %v1600_v8 }
 0x17f   : > { %v844_v32 = vpop.f32.mrf.mxu1  ;;  %3360 = vmatmul.msk.f32.gmra.mxu3 %vm566_vm0, %v4203_v12 }
 0x180   : > { %v750_v22 = vpop.f32.mrf.mxu0  ;;  %v938_v3 = vpop.f32.mrf.mxu2 }
 0x181   : > { %v841_v16 = vadd.f32 %v840_v29, %v750_v22  ;;  %v5134_v22 = vand.u32 4294901760, %v3950_v60 }
 0x182   : > { %v1051_v19 = vpop.f32.mrf.mxu3  ;;  %3329 = vmatmul.msk.f32.gmra.mxu1 %vm566_vm0, %v3938_v56 }
 0x183   : > { %v939_v45 = vadd.f32 %v938_v3, %v841_v16  ;;  %3312 = vmatmul.msk.f32.gmra.mxu0 %vm566_vm0, %v3929_v36 }
 0x185   : > { %v4257_v1 = vadd.f32 %v1051_v19, %v939_v45  ;;  %1609 = vmatmul.f32.gmra.mxu2 %v1608_v31 }
 0x187   : > { %v1163_v18 = vpop.f32.mrf.mxu1  ;;  %3361 = vmatmul.msk.f32.gmra.mxu3 %vm566_vm0, %v4223_v4 }
 0x188   : > { %v758_v8 = vpop.f32.mrf.mxu0  ;;  %v943_v44 = vpop.f32.mrf.mxu2 }
 0x189   : > { %v845_v57 = vadd.f32 %v844_v32, %v758_v8  ;;  %v2179_v32 = vpop.permute.xlu2 %2178  ;;  %v2182_v8 = vpop.permute.xlu0 %2181 }
 0x18a   : > { %v1057_v29 = vpop.f32.mrf.mxu3  ;;  %1818 = vmatmul.f32.vlgmr.msra.gmra.mxu1 %v5134_v22  ;;  %vm2225_vm5 = vcmp.eq.s32.totalorder %v3733_v21, %v2179_v32  ;;  %vm2226_vm7 = vcmp.eq.s32.totalorder %v3733_v21, %v2182_v8 }
 0x18b   : > { %v944_v61 = vadd.f32 %v943_v44, %v845_v57  ;;  %3313 = vmatmul.msk.f32.gmra.mxu0 %vm566_vm0, %v3938_v56  ;;  %v5135_v57 = vand.u32 4294901760, %v3961_v11 }
 0x18d   : > { %v4265_v36 = vadd.f32 %v1057_v29, %v944_v61  ;;  %3362 = vmatmul.msk.f32.vlgmr.msra.gmra.mxu2 %vm566_vm0, %v3941_v46 }
 0x18f   : > { %v1167_v3 = vpop.f32.mrf.mxu1  ;;  %3378 = vmatmul.msk.f32.vlgmr.msra.gmra.mxu3 %vm566_vm0, %v3941_v46 }
 0x190   : > { %v1081_v51 = vpop.f32.mrf.mxu0  ;;  %v1490_v16 = vpop.f32.mrf.mxu2 }
 0x191   : > { %v1082_v19 = vadd.f32 %v1081_v51, %v3992_v13 }
 0x192   : > { %v1636_v45 = vpop.f32.mrf.mxu3  ;;  %1824 = vmatmul.f32.gmra.mxu1 %v5135_v57 }
 0x193   : > { %v4274_v44 = vadd.f32 %v1636_v45, %v1490_v16  ;;  %1719 = vmatmul.f32.vlgmr.msra.gmra.mxu0 %v3950_v60  ;;  %v1164_v61 = vadd.f32 %v1163_v18, %v1082_v19  ;;  %v5136_v60 = vand.u32 4294901760, %v3975_v23  ;;  %v2185_v19 = vpop.permute.xlu1 %2184 }
 0x194   : > { %vm2227_vm8 = vcmp.eq.s32.totalorder %v3733_v21, %v2185_v19 }
 0x195   : > { %3363 = vmatmul.msk.f32.gmra.mxu2 %vm566_vm0, %v3953_v63  ;;  %v2257_v56 = vsel %vm2225_vm5, %v1164_v61, 0.0 }
 0x196   : > { %2273 = vadd.xlane.f32.xlu0 %v2257_v56 }
 0x197   : > { %v1171_v46 = vpop.f32.mrf.mxu1  ;;  %3379 = vmatmul.msk.f32.gmra.mxu3 %vm566_vm0, %v3953_v63 }
 0x198   : > { %v1085_v13 = vpop.f32.mrf.mxu0  ;;  %v1498_v31 = vpop.f32.mrf.mxu2 }
 0x199   : > { %v1086_v29 = vadd.f32 %v1085_v13, %v4012_v0 }
 0x19a   : > { %v1640_v22 = vpop.f32.mrf.mxu3  ;;  %1830 = vmatmul.f32.gmra.mxu1 %v5136_v60 }
 0x19b   : > { %v4285_v18 = vadd.f32 %v1640_v22, %v1498_v31  ;;  %1724 = vmatmul.f32.gmra.mxu0 %v3961_v11  ;;  %v1168_v51 = vadd.f32 %v1167_v3, %v1086_v29  ;;  %v5137_v11 = vand.u32 4294901760, %v3995_v14  ;;  %v2188_v31 = vpop.permute.xlu2 %2187 }
 0x19c   : > { %vm2228_vm9 = vcmp.eq.s32.totalorder %v3733_v21, %v2188_v31 }
 0x19d   : > { %3364 = vmatmul.msk.f32.gmra.mxu2 %vm566_vm0, %v3967_v17  ;;  %v2258_v63 = vsel %vm2226_vm7, %v1168_v51, 0.0 }
 0x19e   : > { %2275 = vadd.xlane.f32.xlu1 %v2258_v63  ;;  %v2191_v63 = vpop.permute.xlu0 %2190 }
 0x19f   : > { %v1175_v16 = vpop.f32.mrf.mxu1  ;;  %3380 = vmatmul.msk.f32.gmra.mxu3 %vm566_vm0, %v3967_v17  ;;  %vm2229_vm10 = vcmp.eq.s32.totalorder %v3733_v21, %v2191_v63 }
 0x1a0   : > { %v1089_v0 = vpop.f32.mrf.mxu0  ;;  %v1506_v32 = vpop.f32.mrf.mxu2 }
 0x1a1   : > { %v1090_v45 = vadd.f32 %v1089_v0, %v4032_v2 }
 0x1a2   : > { %v1644_v57 = vpop.f32.mrf.mxu3  ;;  %1836 = vmatmul.f32.gmra.mxu1 %v5137_v11  ;;  %v2194_v11 = vpop.permute.xlu1 %2193 }
 0x1a3   : > { %v4296_v3 = vadd.f32 %v1644_v57, %v1506_v32  ;;  %1729 = vmatmul.f32.gmra.mxu0 %v3975_v23  ;;  %v1172_v61 = vadd.f32 %v1171_v46, %v1090_v45  ;;  %v5138_v23 = vand.u32 4294901760, %v4015_v39  ;;  %vm2230_vm11 = vcmp.eq.s32.totalorder %v3733_v21, %v2194_v11 }
 0x1a5   : > { %3365 = vmatmul.msk.f32.gmra.mxu2 %vm566_vm0, %v3983_v43  ;;  %v2259_v17 = vsel %vm2227_vm8, %v1172_v61, 0.0 }
 0x1a6   : > { %2277 = vadd.xlane.f32.xlu2 %v2259_v17 }
 0x1a7   : > { %v1179_v56 = vpop.f32.mrf.mxu1  ;;  %3381 = vmatmul.msk.f32.gmra.mxu3 %vm566_vm0, %v3983_v43 }
 0x1a8   : > { %v1093_v2 = vpop.f32.mrf.mxu0  ;;  %v1514_v13 = vpop.f32.mrf.mxu2 }
 0x1a9   : > { %v1094_v8 = vadd.f32 %v1093_v2, %v4052_v48 }
 0x1aa   : > { %v1648_v29 = vpop.f32.mrf.mxu3  ;;  %1842 = vmatmul.f32.gmra.mxu1 %v5138_v23 }
 0x1ab   : > { %v4307_v46 = vadd.f32 %v1648_v29, %v1514_v13  ;;  %1734 = vmatmul.f32.gmra.mxu0 %v3995_v14  ;;  %v1176_v22 = vadd.f32 %v1175_v16, %v1094_v8  ;;  %v5139_v14 = vand.u32 4294901760, %v4035_v62  ;;  %v2197_v8 = vpop.permute.xlu2 %2196 }
 0x1ac   : > { %vm2231_vm12 = vcmp.eq.s32.totalorder %v3733_v21, %v2197_v8 }
 0x1ad   : > { %3366 = vmatmul.msk.f32.gmra.mxu2 %vm566_vm0, %v4003_v49  ;;  %v2260_v43 = vsel %vm2228_vm9, %v1176_v22, 0.0 }
 0x1ae   : > { %2279 = vadd.xlane.f32.xlu2 %v2260_v43 }
 0x1af   : > { %v1183_v60 = vpop.f32.mrf.mxu1  ;;  %3382 = vmatmul.msk.f32.gmra.mxu3 %vm566_vm0, %v4003_v49 }
 0x1b0   : > { %v1097_v48 = vpop.f32.mrf.mxu0  ;;  %v1522_v51 = vpop.f32.mrf.mxu2 }
 0x1b1   : > { %v1098_v0 = vadd.f32 %v1097_v48, %v4072_v38 }
 0x1b2   : > { %v1652_v32 = vpop.f32.mrf.mxu3  ;;  %1848 = vmatmul.f32.gmra.mxu1 %v5139_v14 }
 0x1b3   : > { %v4318_v16 = vadd.f32 %v1652_v32, %v1522_v51  ;;  %1739 = vmatmul.f32.gmra.mxu0 %v4015_v39  ;;  %v1180_v19 = vadd.f32 %v1179_v56, %v1098_v0  ;;  %v5140_v39 = vand.u32 4294901760, %v4055_v52  ;;  %v2200_v51 = vpop.permute.xlu0 %2199 }
 0x1b4   : > { %vm2232_vm13 = vcmp.eq.s32.totalorder %v3733_v21, %v2200_v51 }
 0x1b5   : > { %3367 = vmatmul.msk.f32.gmra.mxu2 %vm566_vm0, %v4023_v47  ;;  %v2261_v49 = vsel %vm2229_vm10, %v1180_v19, 0.0 }
 0x1b6   : > { %2281 = vadd.xlane.f32.xlu0 %v2261_v49 }
 0x1b7   : > { %v1187_v45 = vpop.f32.mrf.mxu1  ;;  %3383 = vmatmul.msk.f32.gmra.mxu3 %vm566_vm0, %v4023_v47 }
 0x1b8   : > { %v1101_v38 = vpop.f32.mrf.mxu0  ;;  %v1530_v57 = vpop.f32.mrf.mxu2 }
 0x1b9   : > { %v1102_v61 = vadd.f32 %v1101_v38, %v4092_v58 }
 0x1ba   : > { %v1656_v17 = vpop.f32.mrf.mxu3  ;;  %1854 = vmatmul.f32.gmra.mxu1 %v5140_v39 }
 0x1bb   : > { %v4329_v56 = vadd.f32 %v1656_v17, %v1530_v57  ;;  %1744 = vmatmul.f32.gmra.mxu0 %v4035_v62  ;;  %v1184_v2 = vadd.f32 %v1183_v60, %v1102_v61  ;;  %v5141_v62 = vand.u32 4294901760, %v4075_v24 }
 0x1bd   : > { %3368 = vmatmul.msk.f32.gmra.mxu2 %vm566_vm0, %v4043_v7  ;;  %v2262_v47 = vsel %vm2230_vm11, %v1184_v2, 0.0  ;;  %v2206_v2 = vpop.permute.xlu2 %2205 }
 0x1be   : > { %2283 = vadd.xlane.f32.xlu1 %v2262_v47  ;;  %vm2234_vm15 = vcmp.eq.s32.totalorder %v3733_v21, %v2206_v2 }
 0x1bf   : > { %v1191_v13 = vpop.f32.mrf.mxu1  ;;  %3384 = vmatmul.msk.f32.gmra.mxu3 %vm566_vm0, %v4043_v7 }
 0x1c0   : > { %v1105_v58 = vpop.f32.mrf.mxu0  ;;  %v1538_v31 = vpop.f32.mrf.mxu2 }
 0x1c1   : > { %v1106_v29 = vadd.f32 %v1105_v58, %v4112_v40 }
 0x1c2   : > { %v1660_v23 = vpop.f32.mrf.mxu3  ;;  %1860 = vmatmul.f32.gmra.mxu1 %v5141_v62 }
 0x1c3   : > { %v4340_v22 = vadd.f32 %v1660_v23, %v1538_v31  ;;  %1749 = vmatmul.f32.gmra.mxu0 %v4055_v52  ;;  %v1188_v43 = vadd.f32 %v1187_v45, %v1106_v29  ;;  %v5142_v52 = vand.u32 4294901760, %v4095_v53  ;;  %v2203_v45 = vpop.permute.xlu1 %2202  ;;  %v2209_v23 = vpop.permute.xlu0 %2208 }
 0x1c4   : > { %vm2233_vm14 = vcmp.eq.s32.totalorder %v3733_v21, %v2203_v45  ;;  %vm2235_vm1 = vcmp.eq.s32.totalorder %v3733_v21, %v2209_v23 }
 0x1c5   : > { %3369 = vmatmul.msk.f32.gmra.mxu2 %vm566_vm0, %v4063_v55  ;;  %v2263_v7 = vsel %vm2231_vm12, %v1188_v43, 0.0 }
 0x1c6   : > { %2285 = vadd.xlane.f32.xlu2 %v2263_v7 }
 0x1c7   : > { %v1195_v60 = vpop.f32.mrf.mxu1  ;;  %3385 = vmatmul.msk.f32.gmra.mxu3 %vm566_vm0, %v4063_v55 }
 0x1c8   : > { %v1109_v40 = vpop.f32.mrf.mxu0  ;;  %v1546_v48 = vpop.f32.mrf.mxu2 }
 0x1c9   : > { %v1110_v63 = vadd.f32 %v1109_v40, %v4132_v33 }
 0x1ca   : > { %v1664_v0 = vpop.f32.mrf.mxu3  ;;  %1866 = vmatmul.f32.gmra.mxu1 %v5142_v52 }
 0x1cb   : > { %v4351_v32 = vadd.f32 %v1664_v0, %v1546_v48  ;;  %1754 = vmatmul.f32.gmra.mxu0 %v4075_v24  ;;  %v1192_v14 = vadd.f32 %v1191_v13, %v1110_v63  ;;  %v5143_v24 = vand.u32 4294901760, %v4115_v28  ;;  %v2212_v51 = vpop.permute.xlu1 %2211 }
 0x1cc   : > { %vm2236_vm2 = vcmp.eq.s32.totalorder %v3733_v21, %v2212_v51 }
 0x1cd   : > { %3370 = vmatmul.msk.f32.gmra.mxu2 %vm566_vm0, %v4083_v15  ;;  %v2264_v55 = vsel %vm2232_vm13, %v1192_v14, 0.0 }
 0x1ce   : > { %2287 = vadd.xlane.f32.xlu0 %v2264_v55  ;;  %v2218_v55 = vpop.permute.xlu0 %2217 }
 0x1cf   : > { %v1199_v19 = vpop.f32.mrf.mxu1  ;;  %3386 = vmatmul.msk.f32.gmra.mxu3 %vm566_vm0, %v4083_v15  ;;  %vm2238_vm4 = vcmp.eq.s32.totalorder %v3733_v21, %v2218_v55 }
 0x1d0   : > { %v1113_v33 = vpop.f32.mrf.mxu0  ;;  %v1554_v49 = vpop.f32.mrf.mxu2 }
 0x1d1   : > { %v1114_v38 = vadd.f32 %v1113_v33, %v4152_v37 }
 0x1d2   : > { %v1668_v57 = vpop.f32.mrf.mxu3  ;;  %1872 = vmatmul.f32.gmra.mxu1 %v5143_v24 }
 0x1d3   : > { %v4362_v11 = vadd.f32 %v1668_v57, %v1554_v49  ;;  %1759 = vmatmul.f32.gmra.mxu0 %v4095_v53  ;;  %v1196_v61 = vadd.f32 %v1195_v60, %v1114_v38  ;;  %v5144_v53 = vand.u32 4294901760, %v4135_v30  ;;  %v2215_v49 = vpop.permute.xlu2 %2214 }
 0x1d4   : > { %vm2237_vm3 = vcmp.eq.s32.totalorder %v3733_v21, %v2215_v49 }
 0x1d5   : > { %3371 = vmatmul.msk.f32.gmra.mxu2 %vm566_vm0, %v4103_v6  ;;  %v2265_v15 = vsel %vm2233_vm14, %v1196_v61, 0.0 }
 0x1d6   : > { %2289 = vadd.xlane.f32.xlu1 %v2265_v15  ;;  %v4412_v61 = vpop.permute.xlu0 %2306 }
 0x1d7   : > { %v1203_v17 = vpop.f32.mrf.mxu1  ;;  %3387 = vmatmul.msk.f32.gmra.mxu3 %vm566_vm0, %v4103_v6 }
 0x1d8   : > { %v1117_v37 = vpop.f32.mrf.mxu0  ;;  %v1562_v39 = vpop.f32.mrf.mxu2 }
 0x1d9   : > { %v1118_v47 = vadd.f32 %v1117_v37, %v4172_v26 }
 0x1da   : > { %v1672_v13 = vpop.f32.mrf.mxu3  ;;  %1878 = vmatmul.f32.gmra.mxu1 %v5144_v53 }
 0x1db   : > { %v4373_v58 = vadd.f32 %v1672_v13, %v1562_v39  ;;  %1764 = vmatmul.f32.gmra.mxu0 %v4115_v28  ;;  %v1200_v31 = vadd.f32 %v1199_v19, %v1118_v47  ;;  %v5145_v28 = vand.u32 4294901760, %v4155_v41  ;;  %v2224_v13 = vpop.permute.xlu2 %2223 }
 0x1dc   : > { %vm2240_vm7 = vcmp.eq.s32.totalorder %v3733_v21, %v2224_v13 }
 0x1dd   : > { %3372 = vmatmul.msk.f32.gmra.mxu2 %vm566_vm0, %v4123_v5  ;;  %v2266_v6 = vsel %vm2234_vm15, %v1200_v31, 0.0 }
 0x1de   : > { %2291 = vadd.xlane.f32.xlu2 %v2266_v6  ;;  %v2221_v6 = vpop.permute.xlu1 %2220 }
 0x1df   : > { %v1207_v8 = vpop.f32.mrf.mxu1  ;;  %3388 = vmatmul.msk.f32.gmra.mxu3 %vm566_vm0, %v4123_v5  ;;  %vm2239_vm5 = vcmp.eq.s32.totalorder %v3733_v21, %v2221_v6 }
 0x1e0   : > { %v1121_v26 = vpop.f32.mrf.mxu0  ;;  %v1570_v29 = vpop.f32.mrf.mxu2 }
 0x1e1   : > { %v1122_v62 = vadd.f32 %v1121_v26, %v4192_v20 }
 0x1e2   : > { %v1676_v43 = vpop.f32.mrf.mxu3  ;;  %1884 = vmatmul.f32.gmra.mxu1 %v5145_v28 }
 0x1e3   : > { %v4384_v7 = vadd.f32 %v1676_v43, %v1570_v29  ;;  %1769 = vmatmul.f32.gmra.mxu0 %v4135_v30  ;;  %v1204_v60 = vadd.f32 %v1203_v17, %v1122_v62  ;;  %v5146_v30 = vand.u32 4294901760, %v4175_v35  ;;  %v5149_v29 = vand.u32 4294901760, %v4234_v27  ;;  %v2313_v43 = vpop.permute.xlu2 %2312 }
 0x1e4   : > { %vm2355_vm9 = vcmp.eq.s32.totalorder %v3733_v21, %v2313_v43 }
 0x1e5   : > { %3373 = vmatmul.msk.f32.gmra.mxu2 %vm566_vm0, %v4143_v42  ;;  %v2267_v5 = vsel %vm2235_vm1, %v1204_v60, 0.0 }
 0x1e6   : > { %2293 = vadd.xlane.f32.xlu0 %v2267_v5  ;;  %v2310_v51 = vpop.permute.xlu1 %2309 }
 0x1e7   : > { %v1211_v40 = vpop.f32.mrf.mxu1  ;;  %3389 = vmatmul.msk.f32.gmra.mxu3 %vm566_vm0, %v4143_v42  ;;  %vm2354_vm8 = vcmp.eq.s32.totalorder %v3733_v21, %v2310_v51 }
 0x1e8   : > { %v1125_v20 = vpop.f32.mrf.mxu0  ;;  %v1578_v48 = vpop.f32.mrf.mxu2 }
 0x1e9   : > { %v1126_v63 = vadd.f32 %v1125_v20, %v4212_v59 }
 0x1ea   : > { %v1680_v0 = vpop.f32.mrf.mxu3  ;;  %1890 = vmatmul.f32.gmra.mxu1 %v5146_v30 }
 0x1eb   : > { %v4395_v52 = vadd.f32 %v1680_v0, %v1578_v48  ;;  %1774 = vmatmul.f32.gmra.mxu0 %v4155_v41  ;;  %v1208_v14 = vadd.f32 %v1207_v8, %v1126_v63  ;;  %v5147_v41 = vand.u32 4294901760, %v4195_v25  ;;  %v4427_v8 = vpop.permute.xlu0 %2315 }
 0x1ec   : > { %vm2356_vm10 = vcmp.eq.s32.totalorder %v3733_v21, %v4427_v8 }
 0x1ed   : > { %3374 = vmatmul.msk.f32.gmra.mxu2 %vm566_vm0, %v4163_v9  ;;  %v2268_v42 = vsel %vm2236_vm2, %v1208_v14, 0.0  ;;  %v4447_v14 = vpop.permute.xlu2 %2324 }
 0x1ee   : > { %2295 = vadd.xlane.f32.xlu1 %v2268_v42  ;;  %vm2359_vm13 = vcmp.eq.s32.totalorder %v3733_v21, %v4447_v14 }
 0x1ef   : > { %v1215_v19 = vpop.f32.mrf.mxu1  ;;  %3390 = vmatmul.msk.f32.gmra.mxu3 %vm566_vm0, %v4163_v9 }
 0x1f0   : > { %v1129_v59 = vpop.f32.mrf.mxu0  ;;  %v1586_v33 = vpop.f32.mrf.mxu2 }
 0x1f1   : > { %v1130_v45 = vadd.f32 %v1129_v59, %v4232_v34 }
 0x1f2   : > { %v1684_v38 = vpop.f32.mrf.mxu3  ;;  %1896 = vmatmul.f32.gmra.mxu1 %v5147_v41 }
 0x1f3   : > { %v4406_v57 = vadd.f32 %v1684_v38, %v1586_v33  ;;  %1779 = vmatmul.f32.gmra.mxu0 %v4175_v35  ;;  %v1212_v24 = vadd.f32 %v1211_v40, %v1130_v45  ;;  %v5148_v35 = vand.u32 4294901760, %v4215_v10  ;;  %v4441_v20 = vpop.permute.xlu0 %2321  ;;  %v2319_v33 = vpop.permute.xlu1 %2318 }
 0x1f4   : > { %vm2357_vm11 = vcmp.eq.s32.totalorder %v3733_v21, %v2319_v33  ;;  %vm2358_vm12 = vcmp.eq.s32.totalorder %v3733_v21, %v4441_v20 }
 0x1f5   : > { %3375 = vmatmul.msk.f32.gmra.mxu2 %vm566_vm0, %v4183_v54  ;;  %v2269_v9 = vsel %vm2237_vm3, %v1212_v24, 0.0 }
 0x1f6   : > { %2297 = vadd.xlane.f32.xlu2 %v2269_v9 }
 0x1f7   : > { %v1219_v15 = vpop.f32.mrf.mxu1  ;;  %3391 = vmatmul.msk.f32.gmra.mxu3 %vm566_vm0, %v4183_v54 }
 0x1f8   : > { %v1133_v34 = vpop.f32.mrf.mxu0  ;;  %v1594_v17 = vpop.f32.mrf.mxu2 }
 0x1f9   : > { %v1134_v37 = vadd.f32 %v1133_v34, %v4246_v50 }
 0x1fa   : > { %v1688_v39 = vpop.f32.mrf.mxu3  ;;  %1902 = vmatmul.f32.gmra.mxu1 %v5148_v35 }
 0x1fb   : > { %v4419_v2 = vadd.f32 %v1688_v39, %v1594_v17  ;;  %1784 = vmatmul.f32.gmra.mxu0 %v4195_v25  ;;  %v1216_v47 = vadd.f32 %v1215_v19, %v1134_v37  ;;  %v4450_v19 = vpop.permute.xlu0 %2330 }
 0x1fc   : > { %vm2361_vm15 = vcmp.eq.s32.totalorder %v3733_v21, %v4450_v19 }
 0x1fd   : > { %3376 = vmatmul.msk.f32.gmra.mxu2 %vm566_vm0, %v4203_v12  ;;  %v2270_v54 = vsel %vm2238_vm4, %v1216_v47, 0.0 }
 0x1fe   : > { %2299 = vadd.xlane.f32.xlu0 %v2270_v54 }
 0x1ff   : > { %v1223_v53 = vpop.f32.mrf.mxu1  ;;  %3392 = vmatmul.msk.f32.gmra.mxu3 %vm566_vm0, %v4203_v12 }
 0x200   : > { %v1137_v50 = vpop.f32.mrf.mxu0  ;;  %v1602_v31 = vpop.f32.mrf.mxu2 }
 0x201   : > { %v1138_v25 = vadd.f32 %v1137_v50, %v4257_v1 }
 0x202   : > { %v1692_v26 = vpop.f32.mrf.mxu3  ;;  %1908 = vmatmul.f32.gmra.mxu1 %v5149_v29 }
 0x203   : > { %v4432_v23 = vadd.f32 %v1692_v26, %v1602_v31  ;;  %1789 = vmatmul.f32.gmra.mxu0 %v4215_v10  ;;  %v1220_v62 = vadd.f32 %v1219_v15, %v1138_v25  ;;  %v4455_v15 = vpop.permute.xlu2 %2333  ;;  %v4457_v17 = vpop.permute.xlu0 %2339 }
 0x204   : > { %vm2362_vm1 = vcmp.eq.s32.totalorder %v3733_v21, %v4455_v15  ;;  %vm2364_vm3 = vcmp.eq.s32.totalorder %v3733_v21, %v4457_v17 }
 0x205   : > { %3377 = vmatmul.msk.f32.gmra.mxu2 %vm566_vm0, %v4223_v4  ;;  %v2271_v12 = vsel %vm2239_vm5, %v1220_v62, 0.0 }
 0x206   : > { %2301 = vadd.xlane.f32.xlu1 %v2271_v12 }
 0x207   : > { %v1819_v28 = vpop.f32.mrf.mxu1  ;;  %3393 = vmatmul.msk.f32.gmra.mxu3 %vm566_vm0, %v4223_v4  ;;  %vm2353_vm0 = vcmp.eq.s32.totalorder %v3733_v21, %v4412_v61  ;;  %v4460_v61 = vpop.permute.xlu1 %2327 }
 0x208   : > { %v1141_v1 = vpop.f32.mrf.mxu0  ;;  %v1610_v60 = vpop.f32.mrf.mxu2  ;;  %vm2360_vm14 = vcmp.eq.s32.totalorder %v3733_v21, %v4460_v61 }
 0x209   : > { %v1142_v5 = vadd.f32 %v1141_v1, %v4265_v36 }
 0x20a   : > { %v1696_v40 = vpop.f32.mrf.mxu3 }
 0x20b   : > { %v4443_v10 = vadd.f32 %v1696_v40, %v1610_v60  ;;  %1794 = vmatmul.f32.gmra.mxu0 %v4234_v27  ;;  %v1224_v48 = vadd.f32 %v1223_v53, %v1142_v5  ;;  %v4463_v50 = vpop.permute.xlu2 %2342  ;;  %v4466_v62 = vpop.permute.xlu0 %2348 }
 0x20c   : > { %vm2365_vm4 = vcmp.eq.s32.totalorder %v3733_v21, %v4463_v50 }
 0x20d   : > { %v2272_v63 = vsel %vm2240_vm7, %v1224_v48, 0.0 }
 0x20e   : > { %2303 = vadd.xlane.f32.xlu2 %v2272_v63 }
 0x20f   : > { %v1825_v0 = vpop.f32.mrf.mxu1 }
 0x210   : > { %v1720_v30 = vpop.f32.mrf.mxu0  ;;  %v1933_v4 = vpop.f32.mrf.mxu2 }
 0x211   : > { %v1721_v36 = vadd.f32 %v1720_v30, %v4274_v44 }
 0x212   : > { %v2015_v55 = vpop.f32.mrf.mxu3 }
 0x213   : > { %v1820_v42 = vadd.f32 %v1819_v28, %v1721_v36  ;;  %v4471_v40 = vpop.permute.xlu2 %2351 }
 0x215   : > { %v1934_v59 = vadd.f32 %v1933_v4, %v1820_v42  ;;  %v4476_v4 = vpop.permute.xlu0 %2743 }
 0x216   : > { %5150 = vst [vmem:[#allocation5_spill] sm:$0xff] %v4476_v4 }
 0x217   : > { %v2016_v27 = vadd.f32 %v2015_v55, %v1934_v59  ;;  %v1831_v49 = vpop.f32.mrf.mxu1 }
 0x218   : > { %v1725_v45 = vpop.f32.mrf.mxu0  ;;  %v1937_v38 = vpop.f32.mrf.mxu2 }
 0x219   : > { %v1726_v41 = vadd.f32 %v1725_v45, %v4285_v18  ;;  %v2385_v24 = vsel %vm2353_vm0, %v2016_v27, 0.0 }
 0x21a   : > { %v2019_v9 = vpop.f32.mrf.mxu3  ;;  %2401 = vadd.xlane.f32.xlu1 %v2385_v24 }
 0x21b   : > { %v1826_v44 = vadd.f32 %v1825_v0, %v1726_v41  ;;  %v4481_v8 = vpop.permute.xlu2 %2748 }
 0x21d   : > { %v1938_v34 = vadd.f32 %v1937_v38, %v1826_v44 }
 0x21f   : > { %v2020_v37 = vadd.f32 %v2019_v9, %v1938_v34  ;;  %v1837_v39 = vpop.f32.mrf.mxu1  ;;  %v4484_v9 = vpop.permute.xlu0 %2758 }
 0x220   : > { %v1730_v35 = vpop.f32.mrf.mxu0  ;;  %v1941_v47 = vpop.f32.mrf.mxu2 }
 0x221   : > { %v1731_v13 = vadd.f32 %v1730_v35, %v4296_v3  ;;  %v2386_v18 = vsel %vm2354_vm8, %v2020_v37, 0.0  ;;  %v4469_v3 = vpop.permute.xlu1 %2336 }
 0x222   : > { %v2023_v54 = vpop.f32.mrf.mxu3  ;;  %2403 = vadd.xlane.f32.xlu0 %v2386_v18  ;;  %vm2363_vm2 = vcmp.eq.s32.totalorder %v3733_v21, %v4469_v3 }
 0x223   : > { %v1832_v53 = vadd.f32 %v1831_v49, %v1731_v13  ;;  %v4491_v18 = vpop.permute.xlu2 %2763 }
 0x225   : > { %v1942_v31 = vadd.f32 %v1941_v47, %v1832_v53  ;;  %v4494_v53 = vld [vmem:[%s3785_s17 + $0x78] sm:$0xff] }
 0x226   : > { %v2527_v20 = vsel %vm2497_vm6, %v4494_v53, 0.0 }
 0x227   : > { %v2024_v6 = vadd.f32 %v2023_v54, %v1942_v31  ;;  %v1843_v25 = vpop.f32.mrf.mxu1 }
 0x228   : > { %v1735_v26 = vpop.f32.mrf.mxu0  ;;  %v1945_v29 = vpop.f32.mrf.mxu2 }
 0x229   : > { %v1736_v12 = vadd.f32 %v1735_v26, %v4307_v46  ;;  %v2387_v28 = vsel %vm2355_vm9, %v2024_v6, 0.0  ;;  %v4478_v55 = vpop.permute.xlu1 %2345  ;;  %v4496_v6 = vpop.permute.xlu0 %2768 }
 0x22a   : > { %v2027_v1 = vpop.f32.mrf.mxu3  ;;  %2405 = vadd.xlane.f32.xlu2 %v2387_v28  ;;  %vm2366_vm5 = vcmp.eq.s32.totalorder %v3733_v21, %v4478_v55 }
 0x22b   : > { %v1838_v60 = vadd.f32 %v1837_v39, %v1736_v12 }
 0x22d   : > { %v1946_v5 = vadd.f32 %v1945_v29, %v1838_v60 }
 0x22f   : > { %v2028_v48 = vadd.f32 %v2027_v1, %v1946_v5  ;;  %v1849_v51 = vpop.f32.mrf.mxu1  ;;  %v5151_v5 = vld [vmem:[#allocation4_spill] sm:$0xff] }
 0x230   : > { %v1740_v43 = vpop.f32.mrf.mxu0  ;;  %v1949_v63 = vpop.f32.mrf.mxu2 }
 0x231   : > { %v1741_v0 = vadd.f32 %v1740_v43, %v4318_v16  ;;  %v2388_v30 = vsel %vm2356_vm10, %v2028_v48, 0.0  ;;  %v4486_v34 = vpop.permute.xlu1 %2753  ;;  %v2528_v48 = vadd.f32 %v2527_v20, %v5151_v5  ;;  %v4506_v43 = vpop.permute.xlu2 %2778 }
 0x232   : > { %v2031_v46 = vpop.f32.mrf.mxu3  ;;  %2407 = vadd.xlane.f32.xlu1 %v2388_v30 }
 0x233   : > { %v1844_v36 = vadd.f32 %v1843_v25, %v1741_v0  ;;  %v2529_v0 = vrot.slane %v2528_v48, 4 }
 0x235   : > { %v1950_v42 = vadd.f32 %v1949_v63, %v1844_v36 }
 0x237   : > { %v2032_v59 = vadd.f32 %v2031_v46, %v1950_v42  ;;  %v1855_v27 = vpop.f32.mrf.mxu1  ;;  %v4510_v42 = vpop.permute.xlu0 %2783 }
 0x238   : > { %v1745_v49 = vpop.f32.mrf.mxu0  ;;  %v1953_v45 = vpop.f32.mrf.mxu2 }
 0x239   : > { %v1746_v38 = vadd.f32 %v1745_v49, %v4329_v56  ;;  %v2389_v16 = vsel %vm2357_vm11, %v2032_v59, 0.0  ;;  %v4502_v12 = vpop.permute.xlu1 %2773  ;;  %v2530_v49 = vadd.f32 %v2529_v0, %v2528_v48  ;;  %vm2367_vm11 = vcmp.eq.s32.totalorder %v3733_v21, %v4466_v62 }
 0x23a   : > { %v2035_v41 = vpop.f32.mrf.mxu3  ;;  %2409 = vadd.xlane.f32.xlu0 %v2389_v16 }
 0x23b   : > { %v1850_v24 = vadd.f32 %v1849_v51, %v1746_v38 }
 0x23d   : > { %v1954_v44 = vadd.f32 %v1953_v45, %v1850_v24  ;;  %v4515_v24 = vpop.permute.xlu2 %2793 }
 0x23f   : > { %v2036_v37 = vadd.f32 %v2035_v41, %v1954_v44  ;;  %v1861_v39 = vpop.f32.mrf.mxu1  ;;  %v2531_v41 = vrot.slane %v2530_v49, 2 }
 0x240   : > { %v1750_v33 = vpop.f32.mrf.mxu0  ;;  %v1957_v35 = vpop.f32.mrf.mxu2 }
 0x241   : > { %v1751_v47 = vadd.f32 %v1750_v33, %v4340_v22  ;;  %v2390_v56 = vsel %vm2358_vm12, %v2036_v37, 0.0  ;;  %v4513_v45 = vpop.permute.xlu1 %2788 }
 0x242   : > { %v2039_v13 = vpop.f32.mrf.mxu3  ;;  %2411 = vadd.xlane.f32.xlu2 %v2390_v56  ;;  %v4520_v56 = vpop.permute.xlu0 %2798 }
 0x243   : > { %v1856_v54 = vadd.f32 %v1855_v27, %v1751_v47  ;;  %v2532_v47 = vadd.f32 %v2531_v41, %v2530_v49 }
 0x245   : > { %v1958_v31 = vadd.f32 %v1957_v35, %v1856_v54 }
 0x247   : > { %v2040_v25 = vadd.f32 %v2039_v13, %v1958_v31  ;;  %v1867_v26 = vpop.f32.mrf.mxu1 }
 0x248   : > { %v1755_v22 = vpop.f32.mrf.mxu0  ;;  %v1961_v29 = vpop.f32.mrf.mxu2 }
 0x249   : > { %v1756_v28 = vadd.f32 %v1755_v22, %v4351_v32  ;;  %v2391_v1 = vsel %vm2359_vm13, %v2040_v25, 0.0  ;;  %v4522_v54 = vpop.permute.xlu1 %2803  ;;  %v2533_v25 = vrot.slane %v2532_v47, 1  ;;  %v4526_v22 = vpop.permute.xlu2 %2808 }
 0x24a   : > { %v2043_v60 = vpop.f32.mrf.mxu3  ;;  %2413 = vadd.xlane.f32.xlu1 %v2391_v1  ;;  %v4529_v48 = vpop.permute.xlu0 %2813 }
 0x24b   : > { %v1862_v51 = vadd.f32 %v1861_v39, %v1756_v28 }
 0x24d   : > { %v1962_v63 = vadd.f32 %v1961_v29, %v1862_v51 }
 0x24f   : > { %v2044_v30 = vadd.f32 %v2043_v60, %v1962_v63  ;;  %v1873_v46 = vpop.f32.mrf.mxu1  ;;  %v2534_v60 = vadd.f32 %v2533_v25, %v2532_v47 }
 0x250   : > { %v1760_v14 = vpop.f32.mrf.mxu0  ;;  %v1965_v36 = vpop.f32.mrf.mxu2 }
 0x251   : > { %v1761_v32 = vadd.f32 %v1760_v14, %v4362_v11  ;;  %v2392_v59 = vsel %vm2360_vm14, %v2044_v30, 0.0  ;;  %v4531_v51 = vpop.xlane.xlu1 %2275  ;;  %v3426_v0 = vadd.f32 -1.0, %v2534_v60 }
 0x252   : > { %v2047_v27 = vpop.f32.mrf.mxu3  ;;  %2415 = vadd.xlane.f32.xlu0 %v2392_v59  ;;  %v4538_v59 = vadd.f32 0.0001, %v2534_v60 }
 0x253   : > { %v1868_v38 = vadd.f32 %v1867_v26, %v1761_v32 }
 0x254   : > { %3461 = vrcp.f32 %v4538_v59  ;;  %vm2627_vm7 = vweird.f32 %v4538_v59 }
 0x255   : > { %v1966_v16 = vadd.f32 %v1965_v36, %v1868_v38  ;;  %v4536_v36 = vpop.xlane.xlu2 %2277 }
 0x257   : > { %v2048_v44 = vadd.f32 %v2047_v27, %v1966_v16  ;;  %v1879_v37 = vpop.f32.mrf.mxu1  ;;  %v2923_v27 = vmul.f32 %v3426_v0, %v2534_v60  ;;  %v4540_v16 = vpop.xlane.xlu0 %2273 }
 0x258   : > { %v1765_v61 = vpop.f32.mrf.mxu0  ;;  %v1969_v39 = vpop.f32.mrf.mxu2 }
 0x259   : > { %v1766_v11 = vadd.f32 %v1765_v61, %v4373_v58  ;;  %v2393_v33 = vsel %vm2361_vm15, %v2048_v44, 0.0  ;;  %v4542_v41 = vpop.xlane.xlu1 %2283  ;;  %v4545_v3 = vadd.f32 0.0001, %v2923_v27 }
 0x25a   : > { %v2051_v35 = vpop.f32.mrf.mxu3  ;;  %2417 = vadd.xlane.f32.xlu2 %v2393_v33 }
 0x25b   : > { %v1874_v13 = vadd.f32 %v1873_v46, %v1766_v11  ;;  %3463 = vrcp.f32 %v4545_v3  ;;  %vm2930_vm9 = vweird.f32 %v4545_v3 }
 0x25d   : > { %v1970_v31 = vadd.f32 %v1969_v39, %v1874_v13  ;;  %v4551_v47 = vpop.xlane.xlu2 %2279  ;;  %v4553_v13 = vpop.eup %3461 }
 0x25e   : > { %vm2628_vm0 = vweird.f32 %v4553_v13 }
 0x25f   : > { %v2052_v26 = vadd.f32 %v2051_v35, %v1970_v31  ;;  %v1885_v28 = vpop.f32.mrf.mxu1  ;;  %v4555_v31 = vpop.xlane.xlu0 %2281  ;;  %vm4590_vm8 = vmor %vm2627_vm7, %vm2628_vm0 }
 0x260   : > { %v1770_v19 = vpop.f32.mrf.mxu0  ;;  %v1973_v20 = vpop.f32.mrf.mxu2 }
 0x261   : > { %v1771_v58 = vadd.f32 %v1770_v19, %v4384_v7  ;;  %v2394_v29 = vsel %vm2362_vm1, %v2052_v26, 0.0  ;;  %v4557_v25 = vpop.xlane.xlu1 %2289  ;;  %vm2368_vm1 = vcmp.eq.s32.totalorder %v3733_v21, %v4471_v40 }
 0x262   : > { %v2055_v1 = vpop.f32.mrf.mxu3  ;;  %2419 = vadd.xlane.f32.xlu1 %v2394_v29  ;;  %v4563_v29 = vpop.eup %3463 }
 0x263   : > { %v1880_v5 = vadd.f32 %v1879_v37, %v1771_v58  ;;  %v2623_v58 = vmul.f32 %v4553_v13, %v4538_v59  ;;  %vm2931_vm10 = vweird.f32 %v4563_v29 }
 0x264   : > { %vm4605_vm13 = vmor %vm2930_vm9, %vm2931_vm10 }
 0x265   : > { %v1974_v63 = vadd.f32 %v1973_v20, %v1880_v5  ;;  %v2624_v0 = vsub.f32 1.0, %v2623_v58 }
 0x267   : > { %v2056_v30 = vadd.f32 %v2055_v1, %v1974_v63  ;;  %v1891_v38 = vpop.f32.mrf.mxu1  ;;  %v4566_v63 = vpop.xlane.xlu2 %2285 }
 0x268   : > { %v1775_v15 = vpop.f32.mrf.mxu0  ;;  %v1977_v46 = vpop.f32.mrf.mxu2 }
 0x269   : > { %v1776_v7 = vadd.f32 %v1775_v15, %v4395_v52  ;;  %v2395_v14 = vsel %vm2363_vm2, %v2056_v30, 0.0  ;;  %v2926_v30 = vmul.f32 %v4563_v29, %v4545_v3  ;;  %v4570_v50 = vpop.xlane.xlu0 %2287  ;;  %v4572_v15 = vpop.xlane.xlu1 %2295 }
 0x26a   : > { %v2059_v32 = vpop.f32.mrf.mxu3  ;;  %2421 = vadd.xlane.f32.xlu0 %v2395_v14 }
 0x26b   : > { %v1886_v49 = vadd.f32 %v1885_v28, %v1776_v7  ;;  %v2927_v27 = vsub.f32 1.0, %v2926_v30 }
 0x26d   : > { %v1978_v44 = vadd.f32 %v1977_v46, %v1886_v49 }
 0x26f   : > { %v2060_v52 = vadd.f32 %v2059_v32, %v1978_v44  ;;  %v1897_v17 = vpop.f32.mrf.mxu1  ;;  %v2625_v32 = vmul.f32 %v4553_v13, %v2624_v0 }
 0x270   : > { %v1780_v37 = vpop.f32.mrf.mxu0  ;;  %v1981_v61 = vpop.f32.mrf.mxu2 }
 0x271   : > { %v1781_v39 = vadd.f32 %v1780_v37, %v4406_v57  ;;  %v2396_v11 = vsel %vm2364_vm3, %v2060_v52, 0.0  ;;  %v2633_v37 = vand.u32 2147483648, %v4538_v59 }
 0x272   : > { %v2063_v33 = vpop.f32.mrf.mxu3  ;;  %2423 = vadd.xlane.f32.xlu2 %v2396_v11  ;;  %v2631_v11 = vand.u32 2147483647, %v4538_v59 }
 0x273   : > { %v1892_v35 = vadd.f32 %v1891_v38, %v1781_v39  ;;  %v2626_v39 = vadd.f32 %v4553_v13, %v2625_v32  ;;  %v2634_v59 = vor.u32 1.1754944e-38, %v2633_v37 }
 0x274   : > { %vm2632_vm12 = vcmp.eq.f32.partialorder %v2631_v11, 8.507059e+37 }
 0x275   : > { %v1982_v26 = vadd.f32 %v1981_v61, %v1892_v35  ;;  %v4581_v61 = vpop.xlane.xlu2 %2291  ;;  %v2630_v58 = vsel %vm4590_vm8, %v4553_v13, %v2626_v39 }
 0x277   : > { %v2064_v19 = vadd.f32 %v2063_v33, %v1982_v26  ;;  %v2928_v33 = vmul.f32 %v4563_v29, %v2927_v27 }
 0x278   : > { %v1785_v57 = vpop.f32.mrf.mxu0  ;;  %v1985_v20 = vpop.f32.mrf.mxu2 }
 0x279   : > { %v1786_v28 = vadd.f32 %v1785_v57, %v4419_v2  ;;  %v2397_v1 = vsel %vm2365_vm4, %v2064_v19, 0.0  ;;  %v1903_v2 = vpop.f32.mrf.mxu1  ;;  %v4588_v35 = vpop.xlane.xlu1 %2301  ;;  %v2936_v57 = vand.u32 2147483648, %v4545_v3 }
 0x27a   : > { %v2067_v60 = vpop.f32.mrf.mxu3  ;;  %2425 = vadd.xlane.f32.xlu1 %v2397_v1  ;;  %v2934_v1 = vand.u32 2147483647, %v4545_v3 }
 0x27b   : > { %v1898_v5 = vadd.f32 %v1897_v17, %v1786_v28  ;;  %v2929_v28 = vadd.f32 %v4563_v29, %v2928_v33  ;;  %v3466_v17 = vld [vmem:[%s3785_s17 + $0x8] sm:$0xff] }
 0x27c   : > { %vm2935_vm15 = vcmp.eq.f32.partialorder %v2934_v1, 8.507059e+37  ;;  %vm2450_vm2 = vcmp.ne.f32.partialorder %v3466_v17, 0.0 }
 0x27d   : > { %v1986_v46 = vadd.f32 %v1985_v20, %v1898_v5  ;;  %v4612_v13 = vpop.xlane.xlu2 %2297 }
 0x27f   : > { %v2068_v7 = vadd.f32 %v2067_v60, %v1986_v46  ;;  %v4609_v46 = vsel %vm2632_vm12, %v2634_v59, %v2630_v58 }
 0x280   : > { %v1790_v14 = vpop.f32.mrf.mxu0  ;;  %v1989_v44 = vpop.f32.mrf.mxu2  ;;  %5156 = vst [vmem:[#allocation4_spill] sm:$0xff] %v4609_v46 }
 0x281   : > { %v1791_v49 = vadd.f32 %v1790_v14, %v4432_v23  ;;  %v2398_v38 = vsel %vm2366_vm5, %v2068_v7, 0.0  ;;  %v4586_v23 = vpop.xlane.xlu0 %2293  ;;  %v1909_v0 = vpop.f32.mrf.mxu1  ;;  %v2937_v7 = vor.u32 1.1754944e-38, %v2936_v57 }
 0x282   : > { %2427 = vadd.xlane.f32.xlu0 %v2398_v38  ;;  %v2071_v55 = vpop.f32.mrf.mxu3 }
 0x283   : > { %v1904_v52 = vadd.f32 %v1903_v2, %v1791_v49  ;;  %v3465_v2 = vld [vmem:[%s3785_s17] sm:$0xff] }
 0x284   : > { %vm2449_vm14 = vcmp.ne.f32.partialorder %v3465_v2, 0.0 }
 0x285   : > { %v1990_v26 = vadd.f32 %v1989_v44, %v1904_v52  ;;  %v2941_v44 = vsub.f32 0.0, %v4609_v46  ;;  %v5157_v52 = vmov 0.0  }
 0x286   : > { %v3394_v37 = vsel %vm2449_vm14, 1.0, %v5157_v52 }
 0x287   : > { %v2072_v19 = vadd.f32 %v2071_v55, %v1990_v26 }
 0x288   : > { %v1795_v20 = vpop.f32.mrf.mxu0  ;;  %v1993_v14 = vpop.f32.mrf.mxu2 }
 0x289   : > { %v1796_v60 = vadd.f32 %v1795_v20, %v4443_v10  ;;  %v2399_v5 = vsel %vm2367_vm11, %v2072_v19, 0.0  ;;  %v2933_v10 = vsel %vm4605_vm13, %v4563_v29, %v2929_v28  ;;  %v4617_v3 = vpop.xlane.xlu0 %2299  ;;  %v4628_v19 = vpop.xlane.xlu2 %2303  ;;  %v3395_v20 = vsel %vm2450_vm2, 1.0, %v5157_v52  ;;  %v3467_v28 = vld [vmem:[%s3785_s17 + $0x10] sm:$0xff] }
 0x28a   : > { %2429 = vadd.xlane.f32.xlu2 %v2399_v5  ;;  %v2075_v49 = vpop.f32.mrf.mxu3  ;;  %v2938_v39 = vsel %vm2935_vm15, %v2937_v7, %v2933_v10  ;;  %vm2451_vm3 = vcmp.ne.f32.partialorder %v3467_v28, 0.0 }
 0x28b   : > { %v1910_v30 = vadd.f32 %v1909_v0, %v1796_v60  ;;  %v2942_v26 = vmul.f32 %v2941_v44, %v2938_v39 }
 0x28d   : > { %v1994_v32 = vadd.f32 %v1993_v14, %v1910_v30  ;;  %v4619_v27 = vpop.xlane.xlu1 %2401  ;;  %v3396_v30 = vsel %vm2451_vm3, 1.0, %v5157_v52  ;;  %v3468_v14 = vld [vmem:[%s3785_s17 + $0x18] sm:$0xff] }
 0x28e   : > { %v2535_v38 = vsub.f32 %v4540_v16, %v4619_v27  ;;  %vm2452_vm4 = vcmp.ne.f32.partialorder %v3468_v14, 0.0 }
 0x28f   : > { %v2076_v55 = vadd.f32 %v2075_v49, %v1994_v32  ;;  %v3397_v44 = vsel %vm2452_vm4, 1.0, %v5157_v52 }
 0x290   : > { %v2551_v29 = vmul.f32 %v2535_v38, %v2535_v38 }
 0x291   : > { %v2400_v11 = vsel %vm2368_vm1, %v2076_v55, 0.0 }
 0x292   : > { %v2567_v33 = vmul.f32 %v3394_v37, %v2551_v29  ;;  %2431 = vadd.xlane.f32.xlu1 %v2400_v11  ;;  %v3469_v29 = vld [vmem:[%s3785_s17 + $0x20] sm:$0xff] }
 0x293   : > { %vm2453_vm5 = vcmp.ne.f32.partialorder %v3469_v29, 0.0 }
 0x294   : > { %v2583_v1 = vsel %vm2497_vm6, %v2567_v33, 0.0  ;;  %v3398_v17 = vsel %vm2453_vm5, 1.0, %v5157_v52 }
 0x295   : > { %v4630_v59 = vpop.xlane.xlu0 %2403 }
 0x296   : > { %v2536_v57 = vsub.f32 %v4531_v51, %v4630_v59  ;;  %3030 = vperm.xlu0 %3458, %v2942_v26  }
 0x298   : > { %v2552_v58 = vmul.f32 %v2536_v57, %v2536_v57 }
 0x29a   : > { %v2568_v40 = vmul.f32 %v3395_v20, %v2552_v58  ;;  %v3470_v58 = vld [vmem:[%s3785_s17 + $0x28] sm:$0xff] }
 0x29b   : > { %vm2454_vm7 = vcmp.ne.f32.partialorder %v3470_v58, 0.0  ;;  %v3473_v58 = vld [vmem:[%s3785_s17 + $0x40] sm:$0xff] }
 0x29c   : > { %v2584_v60 = vsel %vm2497_vm6, %v2568_v40, 0.0  ;;  %vm2457_vm9 = vcmp.ne.f32.partialorder %v3473_v58, 0.0 }
 0x29d   : > { %v2585_v5 = vadd.f32 %v2584_v60, %v2583_v1  ;;  %v4638_v62 = vpop.xlane.xlu2 %2405 }
 0x29e   : > { %v2537_v0 = vsub.f32 %v4536_v36, %v4638_v62 }
 0x2a0   : > { %v2553_v7 = vmul.f32 %v2537_v0, %v2537_v0 }
 0x2a2   : > { %v2569_v2 = vmul.f32 %v3396_v30, %v2553_v7  ;;  %3009 = vperm.xlu2 %3460, %v2938_v39   ;;  %v3471_v7 = vld [vmem:[%s3785_s17 + $0x30] sm:$0xff] }
 0x2a3   : > { %vm2455_vm0 = vcmp.ne.f32.partialorder %v3471_v7, 0.0 }
 0x2a4   : > { %v2586_v10 = vsel %vm2497_vm6, %v2569_v2, 0.0 }
 0x2a5   : > { %v2587_v32 = vadd.f32 %v2586_v10, %v2585_v5  ;;  %v4645_v49 = vpop.xlane.xlu1 %2407  ;;  %v3399_v5 = vsel %vm2454_vm7, 1.0, %v5157_v52 }
 0x2a6   : > { %v2538_v38 = vsub.f32 %v4551_v47, %v4645_v49 }
 0x2a8   : > { %v2554_v37 = vmul.f32 %v2538_v38, %v2538_v38  ;;  %v3400_v38 = vsel %vm2455_vm0, 1.0, %v5157_v52 }
 0x2aa   : > { %v2570_v55 = vmul.f32 %v3397_v44, %v2554_v37 }
 0x2ab   : > { %2818 = vperm.xlu1 %3459, %v4494_v53  }
 0x2ac   : > { %v2588_v39 = vsel %vm2497_vm6, %v2570_v55, 0.0  ;;  %v3472_v55 = vld [vmem:[%s3785_s17 + $0x38] sm:$0xff] }
 0x2ad   : > { %v2589_v11 = vadd.f32 %v2588_v39, %v2587_v32  ;;  %v4653_v33 = vpop.xlane.xlu0 %2409  ;;  %vm2456_vm8 = vcmp.ne.f32.partialorder %v3472_v55, 0.0 }
 0x2ae   : > { %v2539_v26 = vsub.f32 %v4555_v31, %v4653_v33 }
 0x2b0   : > { %v2555_v57 = vmul.f32 %v2539_v26, %v2539_v26 }
 0x2b2   : > { %v2571_v20 = vmul.f32 %v3398_v17, %v2555_v57  ;;  %v3401_v17 = vsel %vm2456_vm8, 1.0, %v5157_v52 }
 0x2b4   : > { %v2590_v40 = vsel %vm2497_vm6, %v2571_v20, 0.0 }
 0x2b5   : > { %v2591_v28 = vadd.f32 %v2590_v40, %v2589_v11  ;;  %v4660_v1 = vpop.xlane.xlu2 %2411 }
 0x2b6   : > { %v2540_v60 = vsub.f32 %v4542_v41, %v4660_v1 }
 0x2b8   : > { %v2556_v0 = vmul.f32 %v2540_v60, %v2540_v60 }
 0x2ba   : > { %v2572_v30 = vmul.f32 %v3399_v5, %v2556_v0  ;;  %v3402_v0 = vsel %vm2457_vm9, 1.0, %v5157_v52 }
 0x2bc   : > { %v2592_v2 = vsel %vm2497_vm6, %v2572_v30, 0.0 }
 0x2bd   : > { %v2593_v14 = vadd.f32 %v2592_v2, %v2591_v28  ;;  %v4667_v10 = vpop.xlane.xlu1 %2413  ;;  %v3474_v2 = vld [vmem:[%s3785_s17 + $0x48] sm:$0xff] }
 0x2be   : > { %v2541_v32 = vsub.f32 %v4566_v63, %v4667_v10  ;;  %vm2458_vm10 = vcmp.ne.f32.partialorder %v3474_v2, 0.0 }
 0x2c0   : > { %v2557_v44 = vmul.f32 %v2541_v32, %v2541_v32 }
 0x2c2   : > { %v2573_v37 = vmul.f32 %v3400_v38, %v2557_v44 }
 0x2c4   : > { %v2594_v29 = vsel %vm2497_vm6, %v2573_v37, 0.0  ;;  %v3403_v37 = vsel %vm2458_vm10, 1.0, %v5157_v52 }
 0x2c5   : > { %v2595_v39 = vadd.f32 %v2594_v29, %v2593_v14  ;;  %v4674_v11 = vpop.xlane.xlu0 %2415 }
 0x2c6   : > { %v2542_v26 = vsub.f32 %v4570_v50, %v4674_v11 }
 0x2c8   : > { %v2558_v57 = vmul.f32 %v2542_v26, %v2542_v26 }
 0x2ca   : > { %v2574_v20 = vmul.f32 %v3401_v17, %v2558_v57 }
 0x2cc   : > { %v2596_v40 = vsel %vm2497_vm6, %v2574_v20, 0.0 }
 0x2cd   : > { %v2597_v28 = vadd.f32 %v2596_v40, %v2595_v39  ;;  %v4681_v60 = vpop.xlane.xlu2 %2417  ;;  %v3475_v39 = vld [vmem:[%s3785_s17 + $0x50] sm:$0xff] }
 0x2ce   : > { %v2543_v5 = vsub.f32 %v4557_v25, %v4681_v60  ;;  %vm2459_vm11 = vcmp.ne.f32.partialorder %v3475_v39, 0.0 }
 0x2cf   : > { %v3404_v58 = vsel %vm2459_vm11, 1.0, %v5157_v52 }
 0x2d0   : > { %v2559_v30 = vmul.f32 %v2543_v5, %v2543_v5 }
 0x2d2   : > { %v2575_v7 = vmul.f32 %v3402_v0, %v2559_v30  ;;  %v3476_v30 = vld [vmem:[%s3785_s17 + $0x58] sm:$0xff] }
 0x2d3   : > { %vm2460_vm12 = vcmp.ne.f32.partialorder %v3476_v30, 0.0  ;;  %v2643_v30 = vadd.f32 %v4653_v33, %v4555_v31  ;;  %v2644_v31 = vadd.f32 %v4660_v1, %v4542_v41  ;;  %v2645_v41 = vadd.f32 %v4667_v10, %v4566_v63 }
 0x2d4   : > { %v2598_v14 = vsel %vm2497_vm6, %v2575_v7, 0.0  ;;  %v2640_v7 = vadd.f32 %v4630_v59, %v4531_v51  ;;  %v3405_v59 = vsel %vm2460_vm12, 1.0, %v5157_v52  ;;  %v2646_v10 = vadd.f32 %v4674_v11, %v4570_v50 }
 0x2d5   : > { %v2599_v32 = vadd.f32 %v2598_v14, %v2597_v28  ;;  %v4688_v38 = vpop.xlane.xlu1 %2419  ;;  %v5158_v28 = vlaneseq  ;;  %v3477_v14 = vld [vmem:[%s3785_s17 + $0x60] sm:$0xff]  ;;  %v4785_v63 = vmul.f32 0.5, %v2644_v31  ;;  %v2647_v50 = vadd.f32 %v4681_v60, %v4557_v25 }
 0x2d6   : > { %v2544_v44 = vsub.f32 %v4581_v61, %v4688_v38  ;;  %vm2461_vm13 = vcmp.ne.f32.partialorder %v3477_v14, 0.0 }
 0x2d7   : > { %v4701_v5 = vshrl.u32 %v5158_v28, 7 }
 0x2d8   : > { %v2560_v55 = vmul.f32 %v2544_v44, %v2544_v44  ;;  %v2639_v44 = vadd.f32 %v4619_v27, %v4540_v16  ;;  %v3406_v16 = vsel %vm2461_vm13, 1.0, %v5157_v52  ;;  %v4724_v27 = vmul.f32 0.5, %v2640_v7 }
 0x2d9   : > { %v2673_v39 = vadd.s32 8, %v4701_v5  ;;  %vm2688_vm3 = vcmp.eq.s32.totalorder %v4701_v5, %v3733_v21  ;;  %v4793_v46 = vadd.s32 80, %v4701_v5 }
 0x2da   : > { %v2576_v29 = vmul.f32 %v3403_v37, %v2560_v55  ;;  %v4735_v28 = vmul.f32 0.5, %v2639_v44 }
 0x2db   : > { %vm2689_vm1 = vcmp.eq.s32.totalorder %v2673_v39, %v3733_v21  ;;  %vm2698_vm9 = vcmp.eq.s32.totalorder %v4793_v46, %v3733_v21 }
 0x2dc   : > { %v2600_v26 = vsel %vm2497_vm6, %v2576_v29, 0.0  ;;  %v3479_v29 = vld [vmem:[%s3785_s17 + $0x70] sm:$0xff]  ;;  %v2704_v44 = vsel %vm2688_vm3, %v4735_v28, 0.0 }
 0x2dd   : > { %v2601_v17 = vadd.f32 %v2600_v26, %v2599_v32  ;;  %v4695_v57 = vpop.xlane.xlu0 %2421  ;;  %v3478_v32 = vld [vmem:[%s3785_s17 + $0x68] sm:$0xff]  ;;  %vm2463_vm15 = vcmp.ne.f32.partialorder %v3479_v29, 0.0  ;;  %v2641_v26 = vadd.f32 %v4638_v62, %v4536_v36  ;;  %v2674_v62 = vadd.s32 16, %v4701_v5 }
 0x2de   : > { %v2545_v20 = vsub.f32 %v4586_v23, %v4695_v57  ;;  %vm2462_vm14 = vcmp.ne.f32.partialorder %v3478_v32, 0.0  ;;  %v4732_v36 = vsel %vm2463_vm15, 1.0, %v5157_v52  ;;  %v4760_v32 = vadd.s32 48, %v4701_v5 }
 0x2df   : > { %vm2690_vm4 = vcmp.eq.s32.totalorder %v2674_v62, %v3733_v21  ;;  %vm2464_vm15 = vcmp.ne.f32.partialorder %v4494_v53, 0.0 }
 0x2e0   : > { %v2561_v40 = vmul.f32 %v2545_v20, %v2545_v20  ;;  %v4721_v20 = vadd.s32 32, %v4701_v5  ;;  %vm2694_vm0 = vcmp.eq.s32.totalorder %v4760_v32, %v3733_v21  ;;  %v2823_v39 = vsel %vm2690_vm4, %v4486_v34, 0.0 }
 0x2e2   : > { %v2577_v0 = vmul.f32 %v3404_v58, %v2561_v40  ;;  %v4729_v40 = vsel %vm2462_vm14, 1.0, %v5157_v52  ;;  %vm2692_vm2 = vcmp.eq.s32.totalorder %v4721_v20, %v3733_v21 }
 0x2e4   : > { %v2602_v2 = vsel %vm2497_vm6, %v2577_v0, 0.0  ;;  %v4738_v0 = vmul.f32 0.5, %v2641_v26 }
 0x2e5   : > { %v2603_v37 = vadd.f32 %v2602_v2, %v2601_v17  ;;  %v4711_v55 = vpop.xlane.xlu2 %2423  ;;  %v2642_v17 = vadd.f32 %v4645_v49, %v4551_v47  ;;  %v4745_v47 = vadd.s32 56, %v4701_v5  ;;  %v2675_v49 = vadd.s32 24, %v4701_v5 }
 0x2e6   : > { %v2546_v51 = vsub.f32 %v4572_v15, %v4711_v55  ;;  %v2705_v2 = vsel %vm2689_vm1, %v4724_v27, 0.0 }
 0x2e7   : > { %v4753_v14 = vmul.f32 0.5, %v2642_v17  ;;  %vm2695_vm5 = vcmp.eq.s32.totalorder %v4745_v47, %v3733_v21  ;;  %vm2691_vm7 = vcmp.eq.s32.totalorder %v2675_v49, %v3733_v21  ;;  %v2677_v17 = vadd.s32 40, %v4701_v5 }
 0x2e8   : > { %v2562_v58 = vmul.f32 %v2546_v51, %v2546_v51  ;;  %v2706_v51 = vsel %vm2690_vm4, %v4738_v0, 0.0  ;;  %v2824_v60 = vsel %vm2691_vm7, %v4484_v9, 0.0  ;;  %v4835_v49 = vadd.s32 72, %v4701_v5 }
 0x2e9   : > { %vm2693_vm8 = vcmp.eq.s32.totalorder %v2677_v17, %v3733_v21 }
 0x2ea   : > { %v2578_v7 = vmul.f32 %v3405_v59, %v2562_v58  ;;  %v4769_v59 = vmul.f32 0.5, %v2643_v30  ;;  %v2720_v58 = vadd.f32 %v2705_v2, %v2704_v44  ;;  %v2707_v30 = vsel %vm2691_vm7, %v4753_v14, 0.0 }
 0x2eb   : > { %v4801_v44 = vmul.f32 0.5, %v2645_v41  ;;  %v2648_v41 = vadd.f32 %v4688_v38, %v4581_v61  ;;  %v2649_v61 = vadd.f32 %v4695_v57, %v4586_v23  ;;  %v2650_v23 = vadd.f32 %v4711_v55, %v4572_v15 }
 0x2ec   : > { %v2604_v33 = vsel %vm2497_vm6, %v2578_v7, 0.0  ;;  %v2721_v2 = vadd.f32 %v2720_v58, %v2706_v51  ;;  %v2708_v31 = vsel %vm2692_vm2, %v4769_v59, 0.0  ;;  %v2709_v51 = vsel %vm2693_vm8, %v4785_v63, 0.0 }
 0x2ed   : > { %v2605_v29 = vadd.f32 %v2604_v33, %v2603_v37  ;;  %v2426_v26 = vpop.xlane.xlu1 %2425  ;;  %v2821_v37 = vsel %vm2688_vm3, %v4476_v4, 0.0  ;;  %v2822_v33 = vsel %vm2689_vm1, %v4481_v8, 0.0  ;;  %v4812_v58 = vmul.f32 0.5, %v2646_v10 }
 0x2ee   : > { %v2547_v1 = vsub.f32 %v4612_v13, %v2426_v26  ;;  %v2722_v4 = vadd.f32 %v2721_v2, %v2707_v30  ;;  %v2710_v10 = vsel %vm2694_vm0, %v4801_v44, 0.0  ;;  %v4841_v2 = vmul.f32 0.5, %v2648_v41 }
 0x2ef   : > { %v2651_v15 = vadd.f32 %v2426_v26, %v4612_v13  ;;  %vm2697_vm11 = vcmp.eq.s32.totalorder %v4835_v49, %v3733_v21  ;;  %v2826_v20 = vsel %vm2693_vm8, %v4496_v6, 0.0  ;;  %v4876_v26 = vadd.s32 96, %v4701_v5 }
 0x2f0   : > { %v2563_v7 = vmul.f32 %v2547_v1, %v2547_v1  ;;  %v2837_v1 = vadd.f32 %v2822_v33, %v2821_v37  ;;  %v2723_v62 = vadd.f32 %v2722_v4, %v2708_v31  ;;  %v2711_v33 = vsel %vm2695_vm5, %v4812_v58, 0.0 }
 0x2f1   : > { %v2825_v31 = vsel %vm2692_vm2, %v4491_v18, 0.0  ;;  %vm2700_vm13 = vcmp.eq.s32.totalorder %v4876_v26, %v3733_v21 }
 0x2f2   : > { %v2579_v11 = vmul.f32 %v3406_v16, %v2563_v7  ;;  %v4821_v16 = vadd.s32 64, %v4701_v5  ;;  %v4827_v7 = vmul.f32 0.5, %v2647_v50  ;;  %v2838_v4 = vadd.f32 %v2837_v1, %v2823_v39 }
 0x2f3   : > { %v4855_v1 = vmul.f32 0.5, %v2649_v61 }
 0x2f4   : > { %v2606_v25 = vsel %vm2497_vm6, %v2579_v11, 0.0  ;;  %v2839_v50 = vadd.f32 %v2838_v4, %v2824_v60  ;;  %vm2696_vm10 = vcmp.eq.s32.totalorder %v4821_v16, %v3733_v21  ;;  %v4871_v60 = vmul.f32 0.5, %v2650_v23 }
 0x2f5   : > { %v2607_v37 = vadd.f32 %v2606_v25, %v2605_v29  ;;  %v2428_v30 = vpop.xlane.xlu0 %2427  ;;  %v2724_v29 = vadd.f32 %v2723_v62, %v2709_v51  ;;  %v2712_v39 = vsel %vm2696_vm10, %v4827_v7, 0.0  ;;  %v4865_v51 = vadd.s32 88, %v4701_v5 }
 0x2f6   : > { %v2548_v38 = vsub.f32 %v4617_v3, %v2428_v30  ;;  %v2713_v25 = vsel %vm2697_vm11, %v4841_v2, 0.0  ;;  %v2840_v17 = vadd.f32 %v2839_v50, %v2825_v31  ;;  %v4882_v4 = vmul.f32 0.5, %v2651_v15 }
 0x2f7   : > { %v2725_v11 = vadd.f32 %v2724_v29, %v2710_v10  ;;  %vm2699_vm12 = vcmp.eq.s32.totalorder %v4865_v51, %v3733_v21 }
 0x2f8   : > { %v2564_v57 = vmul.f32 %v2548_v38, %v2548_v38  ;;  %v2714_v38 = vsel %vm2698_vm9, %v4855_v1, 0.0 }
 0x2f9   : > { %v2726_v41 = vadd.f32 %v2725_v11, %v2711_v33  ;;  %v2827_v11 = vsel %vm2694_vm0, %v4502_v12, 0.0 }
 0x2fa   : > { %v2580_v55 = vmul.f32 %v4729_v40, %v2564_v57  ;;  %v2652_v40 = vadd.f32 %v2428_v30, %v4617_v3  ;;  %v2685_v3 = vadd.s32 104, %v4701_v5  ;;  %v2841_v30 = vadd.f32 %v2840_v17, %v2826_v20 }
 0x2fb   : > { %v2727_v62 = vadd.f32 %v2726_v41, %v2712_v39  ;;  %v2716_v39 = vsel %vm2700_vm13, %v4882_v4, 0.0 }
 0x2fc   : > { %v2608_v13 = vsel %vm2497_vm6, %v2580_v55, 0.0  ;;  %v4893_v57 = vmul.f32 0.5, %v2652_v40  ;;  %vm2701_vm14 = vcmp.eq.s32.totalorder %v2685_v3, %v3733_v21  ;;  %v2842_v20 = vadd.f32 %v2841_v30, %v2827_v11 }
 0x2fd   : > { %v2609_v10 = vadd.f32 %v2608_v13, %v2607_v37  ;;  %v2430_v61 = vpop.xlane.xlu2 %2429  ;;  %v2728_v23 = vadd.f32 %v2727_v62, %v2713_v25  ;;  %v2715_v37 = vsel %vm2699_vm12, %v4871_v60, 0.0  ;;  %v2687_v25 = vadd.s32 120, %v4701_v5 }
 0x2fe   : > { %v2549_v29 = vsub.f32 %v4588_v35, %v2430_v61  ;;  %v2653_v33 = vadd.f32 %v2430_v61, %v4588_v35  ;;  %v2686_v35 = vadd.s32 112, %v4701_v5  ;;  %v2717_v32 = vsel %vm2701_vm14, %v4893_v57, 0.0 }
 0x2ff   : > { %v2729_v50 = vadd.f32 %v2728_v23, %v2714_v38  ;;  %v2829_v5 = vsel %vm2696_vm10, %v4510_v42, 0.0  ;;  %vm2703_vm2 = vcmp.eq.s32.totalorder %v2687_v25, %v3733_v21 }
 0x300   : > { %v2565_v31 = vmul.f32 %v2549_v29, %v2549_v29  ;;  %v4907_v55 = vmul.f32 0.5, %v2653_v33  ;;  %vm2702_vm1 = vcmp.eq.s32.totalorder %v2686_v35, %v3733_v21  ;;  %v3409_v33 = vsel %vm2464_vm15, 1.0, %v5157_v52 }
 0x301   : > { %v2730_v41 = vadd.f32 %v2729_v50, %v2715_v37  ;;  %v2835_v26 = vsel %vm2702_vm1, %v4529_v48, 0.0 }
 0x302   : > { %v2581_v15 = vmul.f32 %v4732_v36, %v2565_v31  ;;  %v2828_v36 = vsel %vm2695_vm5, %v4506_v43, 0.0  ;;  %v2718_v61 = vsel %vm2702_vm1, %v4907_v55, 0.0 }
 0x303   : > { %v2731_v40 = vadd.f32 %v2730_v41, %v2716_v39  ;;  %v2843_v47 = vadd.f32 %v2842_v20, %v2828_v36 }
 0x304   : > { %v2610_v13 = vsel %vm2497_vm6, %v2581_v15, 0.0 }
 0x305   : > { %v2611_v17 = vadd.f32 %v2610_v13, %v2609_v10  ;;  %v2432_v62 = vpop.xlane.xlu1 %2431  ;;  %v2732_v29 = vadd.f32 %v2731_v40, %v2717_v32  ;;  %v2844_v23 = vadd.f32 %v2843_v47, %v2829_v5  ;;  %v2831_v32 = vsel %vm2698_vm9, %v4515_v24, 0.0 }
 0x306   : > { %v2550_v53 = vsub.f32 %v4628_v19, %v2432_v62  ;;  %v2654_v38 = vadd.f32 %v2432_v62, %v4628_v19  ;;  %v2830_v19 = vsel %vm2697_vm11, %v4513_v45, 0.0  ;;  %v2832_v13 = vsel %vm2699_vm12, %v4520_v56, 0.0 }
 0x307   : > { %v2733_v16 = vadd.f32 %v2732_v29, %v2718_v61  ;;  %v2845_v39 = vadd.f32 %v2844_v23, %v2830_v19  ;;  %v2834_v29 = vsel %vm2701_vm14, %v4526_v22, 0.0  ;;  %vm2637_vm11 = vcmask 0  }
 0x308   : > { %v2566_v10 = vmul.f32 %v2550_v53, %v2550_v53  ;;  %v4932_v30 = vmul.f32 0.5, %v2654_v38 }
 0x309   : > { %v2846_v36 = vadd.f32 %v2845_v39, %v2831_v32 }
 0x30a   : > { %v2582_v37 = vmul.f32 %v3409_v33, %v2566_v10  ;;  %v2719_v31 = vsel %vm2703_vm2, %v4932_v30, 0.0 }
 0x30b   : > { %v2734_v50 = vadd.f32 %v2733_v16, %v2719_v31  ;;  %v2847_v49 = vadd.f32 %v2846_v36, %v2832_v13 }
 0x30c   : > { %v2612_v11 = vsel %vm2497_vm6, %v2582_v37, 0.0 }
 0x30d   : > { %v2613_v15 = vadd.f32 %v2612_v11, %v2611_v17  ;;  %v2735_v20 = vrot.slane %v2734_v50, 4  ;;  %v2833_v17 = vsel %vm2700_vm13, %v4522_v54, 0.0 }
 0x30e   : > { %v2848_v61 = vadd.f32 %v2847_v49, %v2833_v17 }
 0x30f   : > { %v2736_v41 = vadd.f32 %v2735_v20, %v2734_v50  ;;  %v2614_v53 = vrot.slane %v2613_v15, 4 }
 0x310   : > { %v2849_v33 = vadd.f32 %v2848_v61, %v2834_v29  ;;  %v4981_v61 = vpop.permute.xlu2 %3009 }
 0x311   : > { %v2737_v40 = vrot.slane %v2736_v41, 2  ;;  %v2615_v10 = vadd.f32 %v2614_v53, %v2613_v15 }
 0x312   : > { %v2850_v37 = vadd.f32 %v2849_v33, %v2835_v26 }
 0x313   : > { %v2738_v62 = vadd.f32 %v2737_v40, %v2736_v41  ;;  %v2616_v35 = vrot.slane %v2615_v10, 2 }
 0x315   : > { %v2739_v5 = vrot.slane %v2738_v62, 1 }
 0x317   : > { %v4954_v38 = vadd.f32 %v2739_v5, %v2738_v62 }
 0x319   : > { %v2945_v46 = vsub.f32 %v4954_v38, %v4738_v0  ;;  %v2944_v51 = vsub.f32 %v4954_v38, %v4724_v27  ;;  %v2943_v47 = vsub.f32 %v4954_v38, %v4735_v28  ;;  %v2948_v23 = vsub.f32 %v4954_v38, %v4785_v63 }
 0x31a   : > { %v2947_v27 = vsub.f32 %v4954_v38, %v4769_v59  ;;  %v2946_v11 = vsub.f32 %v4954_v38, %v4753_v14  ;;  %v2617_v59 = vadd.f32 %v2616_v35, %v2615_v10  ;;  %v2951_v21 = vsub.f32 %v4954_v38, %v4827_v7 }
 0x31b   : > { %v2961_v0 = vand.u32 2147483647, %v2945_v46  ;;  %v2960_v16 = vand.u32 2147483647, %v2944_v51  ;;  %v2959_v31 = vand.u32 2147483647, %v2943_v47  ;;  %v2950_v7 = vsub.f32 %v4954_v38, %v4812_v58 }
 0x31c   : > { %v2964_v19 = vand.u32 2147483647, %v2948_v23  ;;  %v2963_v15 = vand.u32 2147483647, %v2947_v27  ;;  %v2962_v36 = vand.u32 2147483647, %v2946_v11  ;;  %v2949_v23 = vsub.f32 %v4954_v38, %v4801_v44 }
 0x31d   : > { %v4972_v28 = vpop.permute.xlu1 %2818  ;;  %v2977_v63 = vsub.f32 1.0, %v2961_v0  ;;  %v2976_v39 = vsub.f32 1.0, %v2960_v16  ;;  %v2975_v41 = vsub.f32 1.0, %v2959_v31  ;;  %v2618_v17 = vrot.slane %v2617_v59, 1  ;;  %v4990_v16 = vpop.permute.xlu0 %3030  ;;  %v5159_v11 = vld [vmem:[#allocation5_spill] sm:$0xff] }
 0x31e   : > { %v2836_v3 = vsel %vm2703_vm2, %v4972_v28, 0.0  ;;  %v2980_v13 = vsub.f32 1.0, %v2964_v19  ;;  %v2979_v62 = vsub.f32 1.0, %v2963_v15  ;;  %v2978_v46 = vsub.f32 1.0, %v2962_v36 }
 0x31f   : > { %v2851_v50 = vadd.f32 %v2850_v37, %v2836_v3  ;;  %v2993_v40 = vmax.f32 %v2977_v63, 0.0  ;;  %v2992_v49 = vmax.f32 %v2976_v39, 0.0  ;;  %v2991_v5 = vmax.f32 %v2975_v41, 0.0 }
 0x320   : > { %v2996_v53 = vmax.f32 %v2980_v13, 0.0  ;;  %v2995_v29 = vmax.f32 %v2979_v62, 0.0  ;;  %v2967_v26 = vand.u32 2147483647, %v2951_v21  ;;  %v2619_v0 = vadd.f32 %v2618_v17, %v2617_v59 }
 0x321   : > { %v2852_v20 = vrot.slane %v2851_v50, 4  ;;  %v3014_v51 = vmul.f32 %v4981_v61, %v2993_v40  ;;  %v3013_v47 = vmul.f32 %v4981_v61, %v2992_v49  ;;  %v3012_v10 = vmul.f32 %v4981_v61, %v2991_v5 }
 0x322   : > { %v3017_v37 = vmul.f32 %v4981_v61, %v2996_v53  ;;  %v2994_v31 = vmax.f32 %v2978_v46, 0.0  ;;  %v2983_v19 = vsub.f32 1.0, %v2967_v26  ;;  %v2965_v41 = vand.u32 2147483647, %v2949_v23 }
 0x323   : > { %v2853_v32 = vadd.f32 %v2852_v20, %v2851_v50  ;;  %v3035_v3 = vadd.f32 %v4990_v16, %v3014_v51  ;;  %v3034_v35 = vadd.f32 %v4990_v16, %v3013_v47  ;;  %v3016_v50 = vmul.f32 %v4981_v61, %v2995_v29 }
 0x324   : > { %v3033_v39 = vadd.f32 %v4990_v16, %v3012_v10  ;;  %v2966_v20 = vand.u32 2147483647, %v2950_v7  ;;  %v2954_v59 = vsub.f32 %v4954_v38, %v4871_v60  ;;  %v2953_v60 = vsub.f32 %v4954_v38, %v4855_v1 }
 0x325   : > { %v2854_v25 = vrot.slane %v2853_v32, 2  ;;  %v3015_v62 = vmul.f32 %v4981_v61, %v2994_v31  ;;  %v2999_v21 = vmax.f32 %v2983_v19, 0.0  ;;  %v2981_v5 = vsub.f32 1.0, %v2965_v41 }
 0x326   : > { %v3038_v17 = vadd.f32 %v4990_v16, %v3017_v37  ;;  %v2970_v1 = vand.u32 2147483647, %v2954_v59  ;;  %v2969_v53 = vand.u32 2147483647, %v2953_v60  ;;  %v2957_v37 = vsub.f32 %v4954_v38, %v4907_v55 }
 0x327   : > { %v2855_v14 = vadd.f32 %v2854_v25, %v2853_v32  ;;  %v2620_v25 = vmul.f32 0.5, %v2619_v0  ;;  %v3036_v47 = vadd.f32 %v4990_v16, %v3015_v62  ;;  %v3020_v29 = vmul.f32 %v4981_v61, %v2999_v21 }
 0x328   : > { %v2997_v23 = vmax.f32 %v2981_v5, 0.0  ;;  %v2958_v5 = vsub.f32 %v4954_v38, %v4932_v30 }
 0x329   : > { %v2856_v33 = vrot.slane %v2855_v14, 1 }
 0x32b   : > { %v4992_v27 = vadd.f32 %v2856_v33, %v2855_v14  ;;  %v3037_v14 = vadd.f32 %v4990_v16, %v3016_v50  ;;  %v2985_v50 = vsub.f32 1.0, %v2969_v53 }
 0x32d   : > { %v2860_v58 = vadd.f32 %v4992_v27, %v4486_v34  ;;  %v2859_v44 = vadd.f32 %v4992_v27, %v4481_v8  ;;  %v2858_v63 = vadd.f32 %v4992_v27, %v5159_v11  ;;  %v2863_v15 = vadd.f32 %v4992_v27, %v4496_v6 }
 0x32e   : > { %v2862_v34 = vadd.f32 %v4992_v27, %v4491_v18  ;;  %v2861_v6 = vadd.f32 %v4992_v27, %v4484_v9  ;;  %v2982_v18 = vsub.f32 1.0, %v2966_v20  ;;  %v2952_v9 = vsub.f32 %v4954_v38, %v4841_v2 }
 0x32f   : > { %vm2876_vm6 = vcmp.eq.f32.partialorder %v2860_v58, 2.0  ;;  %vm2875_vm3 = vcmp.eq.f32.partialorder %v2859_v44, 2.0  ;;  %vm2874_vm4 = vcmp.eq.f32.partialorder %v2858_v63, 2.0  ;;  %vm2879_vm5 = vcmp.eq.f32.partialorder %v2863_v15, 2.0  ;;  %v5160_v58 = vld [vmem:[#allocation4_spill] sm:$0xff] }
 0x330   : > { %v3412_v8 = vsel %vm2876_vm6, 1.0, %v5157_v52  ;;  %v3411_v32 = vsel %vm2875_vm3, 1.0, %v5157_v52  ;;  %v3410_v13 = vsel %vm2874_vm4, 1.0, %v5157_v52  ;;  %vm2878_vm7 = vcmp.eq.f32.partialorder %v2862_v34, 2.0 }
 0x331   : > { %v3051_v36 = vmul.f32 %v3412_v8, %v3035_v3  ;;  %v3050_v40 = vmul.f32 %v3411_v32, %v3034_v35  ;;  %v3049_v49 = vmul.f32 %v3410_v13, %v3033_v39  ;;  %vm2877_vm0 = vcmp.eq.f32.partialorder %v2861_v6, 2.0 }
 0x332   : > { %v3415_v46 = vsel %vm2879_vm5, 1.0, %v5157_v52  ;;  %v3414_v51 = vsel %vm2878_vm7, 1.0, %v5157_v52  ;;  %v3413_v26 = vsel %vm2877_vm0, 1.0, %v5157_v52  ;;  %v2866_v33 = vadd.f32 %v4992_v27, %v4510_v42 }
 0x333   : > { %3069 = vadd.xlane.f32.xlu0 %v3051_v36  ;;  %3067 = vadd.xlane.f32.xlu2 %v3050_v40  ;;  %v2865_v2 = vadd.f32 %v4992_v27, %v4506_v43  ;;  %v2998_v10 = vmax.f32 %v2982_v18, 0.0  ;;  %v2864_v7 = vadd.f32 %v4992_v27, %v4502_v12  ;;  %v2968_v0 = vand.u32 2147483647, %v2952_v9 }
 0x334   : > { %3065 = vadd.xlane.f32.xlu1 %v3049_v49  ;;  %v3054_v31 = vmul.f32 %v3415_v46, %v3038_v17  ;;  %v3053_v3 = vmul.f32 %v3414_v51, %v3037_v14  ;;  %v2986_v35 = vsub.f32 1.0, %v2970_v1  ;;  %v3052_v19 = vmul.f32 %v3413_v26, %v3036_v47 }
 0x335   : > { %v2956_v42 = vsub.f32 %v4954_v38, %v4893_v57  ;;  %v2636_v44 = vmul.f32 %v5160_v58, %v2620_v25  ;;  %vm2882_vm8 = vcmp.eq.f32.partialorder %v2866_v33, 2.0  ;;  %vm2881_vm9 = vcmp.eq.f32.partialorder %v2865_v2, 2.0 }
 0x336   : > { %v3019_v12 = vmul.f32 %v4981_v61, %v2998_v10  ;;  %vm2880_vm10 = vcmp.eq.f32.partialorder %v2864_v7, 2.0  ;;  %v3018_v43 = vmul.f32 %v4981_v61, %v2997_v23  ;;  %v2984_v55 = vsub.f32 1.0, %v2968_v0 }
 0x337   : > { %v2955_v11 = vsub.f32 %v4954_v38, %v4882_v4  ;;  %v3041_v63 = vadd.f32 %v4990_v16, %v3020_v29  ;;  %v3002_v57 = vmax.f32 %v2986_v35, 0.0  ;;  %v3001_v39 = vmax.f32 %v2985_v50, 0.0  ;;  %2638 = vst.msk [vmem:[%s361_s20] sm:$0x1] %vm2637_vm11, %v2636_v44 }
 0x338   : > { %v2973_v15 = vand.u32 2147483647, %v2957_v37  ;;  %v3418_v20 = vsel %vm2882_vm8, 1.0, %v5157_v52  ;;  %v3417_v41 = vsel %vm2881_vm9, 1.0, %v5157_v52  ;;  %v2869_v59 = vadd.f32 %v4992_v27, %v4520_v56 }
 0x339   : > { %v2972_v34 = vand.u32 2147483647, %v2956_v42  ;;  %v3040_v8 = vadd.f32 %v4990_v16, %v3019_v12  ;;  %v3416_v4 = vsel %vm2880_vm10, 1.0, %v5157_v52  ;;  %v2868_v32 = vadd.f32 %v4992_v27, %v4515_v24 }
 0x33a   : > { %v2867_v13 = vadd.f32 %v4992_v27, %v4513_v45  ;;  %v3039_v6 = vadd.f32 %v4990_v16, %v3018_v43  ;;  %v3000_v36 = vmax.f32 %v2984_v55, 0.0  ;;  %v2971_v40 = vand.u32 2147483647, %v2955_v11 }
 0x33b   : > { %3075 = vadd.xlane.f32.xlu0 %v3054_v31  ;;  %3073 = vadd.xlane.f32.xlu2 %v3053_v3  ;;  %v3057_v56 = vmul.f32 %v3418_v20, %v3041_v63  ;;  %v3056_v49 = vmul.f32 %v3417_v41, %v3040_v8  ;;  %vm2885_vm12 = vcmp.eq.f32.partialorder %v2869_v59, 2.0  ;;  %v3023_v62 = vmul.f32 %v4981_v61, %v3002_v57 }
 0x33c   : > { %3071 = vadd.xlane.f32.xlu1 %v3052_v19  ;;  %v3055_v60 = vmul.f32 %v3416_v4, %v3039_v6  ;;  %v3022_v21 = vmul.f32 %v4981_v61, %v3001_v39  ;;  %vm2884_vm13 = vcmp.eq.f32.partialorder %v2868_v32, 2.0  ;;  %vm2883_vm14 = vcmp.eq.f32.partialorder %v2867_v13, 2.0 }
 0x33d   : > { %v2989_v45 = vsub.f32 1.0, %v2973_v15  ;;  %v2988_v24 = vsub.f32 1.0, %v2972_v34  ;;  %v3021_v18 = vmul.f32 %v4981_v61, %v3000_v36  ;;  %v2987_v25 = vsub.f32 1.0, %v2971_v40 }
 0x33e   : > { %v3421_v9 = vsel %vm2885_vm12, 1.0, %v5157_v52  ;;  %v3044_v17 = vadd.f32 %v4990_v16, %v3023_v62  ;;  %v3420_v14 = vsel %vm2884_vm13, 1.0, %v5157_v52  ;;  %v3043_v1 = vadd.f32 %v4990_v16, %v3022_v21 }
 0x33f   : > { %v3419_v53 = vsel %vm2883_vm14, 1.0, %v5157_v52  ;;  %v2872_v46 = vadd.f32 %v4992_v27, %v4529_v48  ;;  %v3005_v51 = vmax.f32 %v2989_v45, 0.0  ;;  %v2871_v47 = vadd.f32 %v4992_v27, %v4526_v22 }
 0x340   : > { %v3004_v29 = vmax.f32 %v2988_v24, 0.0  ;;  %v3042_v30 = vadd.f32 %v4990_v16, %v3021_v18  ;;  %v2870_v38 = vadd.f32 %v4992_v27, %v4522_v54  ;;  %v3003_v26 = vmax.f32 %v2987_v25, 0.0 }
 0x341   : > { %v2974_v33 = vand.u32 2147483647, %v2958_v5  ;;  %v3060_v2 = vmul.f32 %v3421_v9, %v3044_v17  ;;  %v3059_v10 = vmul.f32 %v3420_v14, %v3043_v1  ;;  %vm2888_vm15 = vcmp.eq.f32.partialorder %v2872_v46, 2.0 }
 0x342   : > { %v3058_v7 = vmul.f32 %v3419_v53, %v3042_v30  ;;  %v3026_v48 = vmul.f32 %v4981_v61, %v3005_v51  ;;  %vm2887_vm1 = vcmp.eq.f32.partialorder %v2871_v47, 2.0  ;;  %v3025_v23 = vmul.f32 %v4981_v61, %v3004_v29 }
 0x343   : > { %3081 = vadd.xlane.f32.xlu0 %v3057_v56  ;;  %3079 = vadd.xlane.f32.xlu2 %v3056_v49  ;;  %vm2886_vm2 = vcmp.eq.f32.partialorder %v2870_v38, 2.0  ;;  %v3024_v22 = vmul.f32 %v4981_v61, %v3003_v26  ;;  %v2990_v0 = vsub.f32 1.0, %v2974_v33  ;;  %v3424_v54 = vsel %vm2888_vm15, 1.0, %v5157_v52 }
 0x344   : > { %3077 = vadd.xlane.f32.xlu1 %v3055_v60  ;;  %v3423_v37 = vsel %vm2887_vm1, 1.0, %v5157_v52  ;;  %v3047_v31 = vadd.f32 %v4990_v16, %v3026_v48  ;;  %v3046_v3 = vadd.f32 %v4990_v16, %v3025_v23  ;;  %v3422_v35 = vsel %vm2886_vm2, 1.0, %v5157_v52 }
 0x345   : > { %v2873_v50 = vadd.f32 %v4992_v27, %v4972_v28  ;;  %v3045_v19 = vadd.f32 %v4990_v16, %v3024_v22  ;;  %v3006_v42 = vmax.f32 %v2990_v0, 0.0 }
 0x346   : > { %v3063_v58 = vmul.f32 %v3424_v54, %v3047_v31  ;;  %v3062_v44 = vmul.f32 %v3423_v37, %v3046_v3 }
 0x347   : > { %v3061_v12 = vmul.f32 %v3422_v35, %v3045_v19  ;;  %vm2889_vm6 = vcmp.eq.f32.partialorder %v2873_v50, 2.0  ;;  %v3027_v43 = vmul.f32 %v4981_v61, %v3006_v42 }
 0x348   : > { %v3425_v55 = vsel %vm2889_vm6, 1.0, %v5157_v52 }
 0x349   : > { %v3048_v11 = vadd.f32 %v4990_v16, %v3027_v43 }
 0x34b   : > { %3087 = vadd.xlane.f32.xlu0 %v3060_v2  ;;  %3085 = vadd.xlane.f32.xlu2 %v3059_v10  ;;  %v3064_v63 = vmul.f32 %v3425_v55, %v3048_v11 }
 0x34c   : > { %3083 = vadd.xlane.f32.xlu1 %v3058_v7 }
 0x353   : > { %3093 = vadd.xlane.f32.xlu0 %v3063_v58  ;;  %3091 = vadd.xlane.f32.xlu2 %v3062_v44 }
 0x354   : > { %3089 = vadd.xlane.f32.xlu1 %v3061_v12 }
 0x35c   : > { %3095 = vadd.xlane.f32.xlu1 %v3064_v63 }
 0x3a6   : > { %v3070_v57 = vpop.xlane.xlu0 %3069  ;;  %v3068_v28 = vpop.xlane.xlu2 %3067 }
 0x3a7   : > { %v3066_v27 = vpop.xlane.xlu1 %3065 }
 0x3a8   : > { %v3097_v39 = vadd.f32 %v3068_v28, %v3066_v27 }
 0x3aa   : > { %v3098_v20 = vadd.f32 %v3097_v39, %v3070_v57 }
 0x3ae   : > { %v3074_v15 = vpop.xlane.xlu2 %3073  ;;  %v3076_v41 = vpop.xlane.xlu0 %3075 }
 0x3af   : > { %v3072_v59 = vpop.xlane.xlu1 %3071 }
 0x3b0   : > { %v3099_v34 = vadd.f32 %v3098_v20, %v3072_v59 }
 0x3b2   : > { %v3100_v8 = vadd.f32 %v3099_v34, %v3074_v15 }
 0x3b4   : > { %v3101_v32 = vadd.f32 %v3100_v8, %v3076_v41 }
 0x3b6   : > { %v3080_v4 = vpop.xlane.xlu2 %3079  ;;  %v3082_v6 = vpop.xlane.xlu0 %3081 }
 0x3b7   : > { %v3078_v13 = vpop.xlane.xlu1 %3077 }
 0x3b8   : > { %v3102_v61 = vadd.f32 %v3101_v32, %v3078_v13 }
 0x3ba   : > { %v3103_v52 = vadd.f32 %v3102_v61, %v3080_v4 }
 0x3bc   : > { %v3104_v36 = vadd.f32 %v3103_v52, %v3082_v6 }
 0x3be   : > { %v3086_v16 = vpop.xlane.xlu2 %3085  ;;  %v3088_v60 = vpop.xlane.xlu0 %3087 }
 0x3bf   : > { %v3084_v40 = vpop.xlane.xlu1 %3083 }
 0x3c0   : > { %v3105_v56 = vadd.f32 %v3104_v36, %v3084_v40 }
 0x3c2   : > { %v3106_v49 = vadd.f32 %v3105_v56, %v3086_v16 }
 0x3c4   : > { %v3107_v62 = vadd.f32 %v3106_v49, %v3088_v60 }
 0x3c6   : > { %v3092_v24 = vpop.xlane.xlu2 %3091  ;;  %v3094_v25 = vpop.xlane.xlu0 %3093 }
 0x3c7   : > { %v3090_v21 = vpop.xlane.xlu1 %3089 }
 0x3c8   : > { %v3108_v45 = vadd.f32 %v3107_v62, %v3090_v21 }
 0x3ca   : > { %v3109_v18 = vadd.f32 %v3108_v45, %v3092_v24 }
 0x3cc   : > { %v3110_v5 = vadd.f32 %v3109_v18, %v3094_v25 }
 0x3cf   : > { %v3096_v9 = vpop.xlane.xlu1 %3095 }
 0x3d0   : > { %v3111_v17 = vadd.f32 %v3110_v5, %v3096_v9 }
 0x3d2   : > { %v3112_v14 = vrot.slane %v3111_v17, 4 }
 0x3d4   : > { %v3113_v1 = vadd.f32 %v3112_v14, %v3111_v17 }
 0x3d6   : > { %v3114_v53 = vrot.slane %v3113_v1, 2 }
 0x3d8   : > { %v3115_v46 = vadd.f32 %v3114_v53, %v3113_v1 }
 0x3da   : > { %v3116_v51 = vrot.slane %v3115_v46, 1 }
 0x3dc   : > { %v3117_v47 = vadd.f32 %v3116_v51, %v3115_v46 }
 0x3de   : > { %3118 = vst.msk [vmem:[%s364_s27] sm:$0x1] %vm2637_vm11, %v3117_v47 }
 0x3df PF: > { %s17_s23 = sadd.s32 1, %s3502_s23   ;;  %s5161_s21 = smov %s3498_s22 }
 0x3e0   : > { %p14_p5 = scmp.ge.s32.totalorder %s17_s23, 4   ;;  %s5162_s22 = smov %s5164_s24 }
 0x3e2   :  { %16 = sbr.rel (!%p14_p5) target bundleno = 2 (0x2), region = 102 }

</bundles_post_ra>
